<compile_context>
chip_gen: v5e
topology: v5e:2x2
jax: 0.10.0
libtpu: 0.0.40
codegen_flags: <defaults>
</compile_context>

<pallas_src>
import math

import jax
import jax.numpy as jnp
from jax import lax
from jax.experimental import pallas as pl

# ---- small, synthetic BERT config ----
B, S = 2, 8            # batch, sequence length
H = 32                 # hidden size
NH = 2                 # attention heads
HD = H // NH           # head dim
FFN = 64               # intermediate size
NUM_LABELS = 5
LPAD = 128             # lane-dense padded label dim
VOCAB = 100
NLAYERS = 2
LN_EPS = 1e-12
IGNORE_INDEX = -100    # nn.CrossEntropyLoss default ignore_index


# ----------------------------- helpers (traced inside the kernel) -----------
def _layernorm(x, g, b):
    mu = jnp.mean(x, axis=-1, keepdims=True)
    var = jnp.mean((x - mu) ** 2, axis=-1, keepdims=True)
    return (x - mu) * lax.rsqrt(var + LN_EPS) * g + b


def _gelu(x):
    # TODO(synk): HF BERT default is the exact erf GELU; tanh approximation used.
    return 0.5 * x * (1.0 + jnp.tanh(0.7978845608028654 * (x + 0.044715 * x * x * x)))


# ----------------------------- fused Pallas kernel ---------------------------
def fused_bert_kernel(x_ref, maskb_ref, lab_ref,
                      elng_ref, elnb_ref,
                      wqkv_ref, bqkv_ref, wo_ref, bo_ref,
                      ln1g_ref, ln1b_ref,
                      wi_ref, bi_ref, wf_ref, bf_ref,
                      ln2g_ref, ln2b_ref,
                      clsw_ref, clsb_ref,
                      logits_ref, loss_ref):
    # Whole batch in one invocation: residual stream stays in vregs/VMEM.
    x = x_ref[...].reshape(B * S, H)                                # f32 (BS, H)
    x = _layernorm(x, elng_ref[...], elnb_ref[...])                 # embedding LN
    neg_bias = (maskb_ref[...] - 1.0) * 1e9                         # (B,1,S): 0 / -1e9

    for li in range(NLAYERS):                  # statically unrolled layer loop
        wqkv = wqkv_ref[li]                    # (H, 3H) bf16 (q cols pre-scaled)
        wo_l = wo_ref[li]                      # (NH, HD, H) bf16

        qkv = jnp.dot(x.astype(jnp.bfloat16), wqkv,
                      preferred_element_type=jnp.float32) + bqkv_ref[li]   # (BS, 3H)

        attn_rows = []
        for b in range(B):                     # statically unrolled batch rows
            qkv_b = qkv[b * S:(b + 1) * S]     # (S, 3H)
            bias_b = neg_bias[b]               # (1, S)
            acc_b = jnp.zeros((S, H), jnp.float32)
            for h in range(NH):                # statically unrolled heads
                q_h = qkv_b[:, h * HD:(h + 1) * HD].astype(jnp.bfloat16)
                k_h = qkv_b[:, H + h * HD:H + (h + 1) * HD].astype(jnp.bfloat16)
                v_h = qkv_b[:, 2 * H + h * HD:2 * H + (h + 1) * HD].astype(jnp.bfloat16)
                s_h = lax.dot_general(          # q @ k^T without explicit .T
                    q_h, k_h, (((1,), (1,)), ((), ())),
                    preferred_element_type=jnp.float32) + bias_b    # (S, S)
                m = jnp.max(s_h, axis=-1, keepdims=True)
                p = jnp.exp(s_h - m)
                p = p * pl.reciprocal(jnp.sum(p, axis=-1, keepdims=True), approx=True)
                ctx = jnp.dot(p.astype(jnp.bfloat16), v_h,
                              preferred_element_type=jnp.float32)   # (S, HD)
                # per-head slab of the output projection; replaces lane concat
                acc_b = acc_b + jnp.dot(ctx.astype(jnp.bfloat16), wo_l[h],
                                        preferred_element_type=jnp.float32)
            attn_rows.append(acc_b)
        attn = jnp.concatenate(attn_rows, axis=0) + bo_ref[li]      # (BS, H)

        h1 = _layernorm(x + attn, ln1g_ref[li], ln1b_ref[li])
        ff = jnp.dot(h1.astype(jnp.bfloat16), wi_ref[li],
                     preferred_element_type=jnp.float32) + bi_ref[li]
        ff = _gelu(ff)
        ff = jnp.dot(ff.astype(jnp.bfloat16), wf_ref[li],
                     preferred_element_type=jnp.float32) + bf_ref[li]
        x = _layernorm(h1 + ff, ln2g_ref[li], ln2b_ref[li])

    # classifier: lane-dense (padded to LPAD); padded cols have bias -1e9 so
    # they vanish in the softmax and are sliced away in the wrapper.
    logits = jnp.dot(x.astype(jnp.bfloat16), clsw_ref[...],
                     preferred_element_type=jnp.float32) + clsb_ref[...]   # (BS,LPAD)
    logits_ref[...] = logits.reshape(B, S, LPAD)

    # masked token-level cross-entropy partial sums over the whole batch
    labels = lab_ref[...].reshape(B * S, 1)                         # int32
    m = jnp.max(logits, axis=-1, keepdims=True)
    z = logits - m
    lse = jnp.log(jnp.sum(jnp.exp(z), axis=-1, keepdims=True))
    logp = z - lse                                                  # (BS, LPAD)
    onehot = lax.broadcasted_iota(jnp.int32, (B * S, LPAD), 1) == labels
    nll = -jnp.sum(jnp.where(onehot, logp, 0.0), axis=-1, keepdims=True)   # (BS,1)
    valid = labels != IGNORE_INDEX
    total = jnp.sum(jnp.where(valid, nll, 0.0))
    count = jnp.sum(valid.astype(jnp.float32))
    lane = lax.broadcasted_iota(jnp.int32, (1, LPAD), 1)
    loss_ref[...] = jnp.where(lane == 0, total,
                              jnp.where(lane == 1, count, 0.0))


# ----------------------------- pallas_call wrapper ---------------------------
def fused_forward(packed, emb, mask_bias, active_labels):
    in_arrays = (emb, mask_bias, active_labels,
                 packed['emb_ln_g'], packed['emb_ln_b'],
                 packed['wqkv'], packed['bqkv'],
                 packed['wo'], packed['bo'],
                 packed['ln1_g'], packed['ln1_b'],
                 packed['wi'], packed['bi'],
                 packed['wf'], packed['bf'],
                 packed['ln2_g'], packed['ln2_b'],
                 packed['cls_w'], packed['cls_b'])
    # No grid: single invocation, every (tiny) operand is a full-array VMEM block.
    logits_pad, loss_row = pl.pallas_call(
        fused_bert_kernel,
        out_shape=(jax.ShapeDtypeStruct((B, S, LPAD), jnp.float32),
                   jax.ShapeDtypeStruct((1, LPAD), jnp.float32)),
    )(*in_arrays)
    return logits_pad, loss_row


# ----------------------------- parameters ------------------------------------
def init_params(key):
    # TODO(synk): BertModel.from_pretrained weight loading has no Pallas
    # equivalent; weights are deterministically random-initialized instead.
    def dense(k, shape, scale=0.02):
        return scale * jax.random.normal(k, shape, dtype=jnp.float32)

    keys = jax.random.split(key, 4 + NLAYERS)
    params = {
        'word_emb': dense(keys[0], (VOCAB, H)),
        'pos_emb': dense(keys[1], (S, H)),
        'type_emb': dense(keys[2], (2, H)),
        'emb_ln_g': jnp.ones((1, H), jnp.float32),
        'emb_ln_b': jnp.zeros((1, H), jnp.float32),
        'cls_w': dense(keys[3], (H, NUM_LABELS)),
        'cls_b': jnp.zeros((1, NUM_LABELS), jnp.float32),
        'layers': [],
    }
    for li in range(NLAYERS):
        lk = jax.random.split(keys[4 + li], 6)
        params['layers'].append({
            'wq': dense(lk[0], (H, H)), 'bq': jnp.zeros((1, H), jnp.float32),
            'wk': dense(lk[1], (H, H)), 'bk': jnp.zeros((1, H), jnp.float32),
            'wv': dense(lk[2], (H, H)), 'bv': jnp.zeros((1, H), jnp.float32),
            'wo': dense(lk[3], (H, H)), 'bo': jnp.zeros((1, H), jnp.float32),
            'ln1_g': jnp.ones((1, H), jnp.float32),
            'ln1_b': jnp.zeros((1, H), jnp.float32),
            'wi': dense(lk[4], (H, FFN)), 'bi': jnp.zeros((1, FFN), jnp.float32),
            'wf': dense(lk[5], (FFN, H)), 'bf': jnp.zeros((1, H), jnp.float32),
            'ln2_g': jnp.ones((1, H), jnp.float32),
            'ln2_b': jnp.zeros((1, H), jnp.float32),
        })
    return params


def pack_params(params):
    """Stack per-layer weights, fuse QKV, fold 1/sqrt(HD) into Wq/bq,
    pad classifier to lane-dense width, cast matmul weights to bf16."""
    scale = 1.0 / math.sqrt(HD)
    L = params['layers']

    def stack(key):
        return jnp.stack([p[key] for p in L])

    wqkv = jnp.stack([jnp.concatenate([p['wq'] * scale, p['wk'], p['wv']], axis=1)
                      for p in L])                                  # (L, H, 3H)
    bqkv = jnp.stack([jnp.concatenate([p['bq'] * scale, p['bk'], p['bv']], axis=1)
                      for p in L])                                  # (L, 1, 3H)
    wo = jnp.stack([p['wo'].reshape(NH, HD, H) for p in L])         # (L, NH, HD, H)

    cls_w = jnp.zeros((H, LPAD), jnp.float32).at[:, :NUM_LABELS].set(params['cls_w'])
    cls_b = jnp.full((1, LPAD), -1e9, jnp.float32).at[:, :NUM_LABELS].set(params['cls_b'])

    return {
        'emb_ln_g': params['emb_ln_g'], 'emb_ln_b': params['emb_ln_b'],
        'wqkv': wqkv.astype(jnp.bfloat16), 'bqkv': bqkv,
        'wo': wo.astype(jnp.bfloat16), 'bo': stack('bo'),
        'ln1_g': stack('ln1_g'), 'ln1_b': stack('ln1_b'),
        'wi': stack('wi').astype(jnp.bfloat16), 'bi': stack('bi'),
        'wf': stack('wf').astype(jnp.bfloat16), 'bf': stack('bf'),
        'ln2_g': stack('ln2_g'), 'ln2_b': stack('ln2_b'),
        'cls_w': cls_w.astype(jnp.bfloat16), 'cls_b': cls_b,
    }


# ----------------------------- forward ----------------------------------------
def bert_for_nmt_forward(params, packed, input_ids, attention_mask, labels=None):
    # embeddings (gathers kept in plain JAX glue)
    pos_ids = jnp.arange(S)
    emb = (params['word_emb'][input_ids]
           + params['pos_emb'][pos_ids][None, :, :]
           + params['type_emb'][0][None, None, :]).astype(jnp.float32)

    mask_bias = attention_mask.astype(jnp.float32).reshape(B, 1, S)
    if labels is None:
        active = jnp.full((B, S), IGNORE_INDEX, jnp.int32)
    else:
        active = jnp.where(attention_mask == 1, labels,
                           IGNORE_INDEX).astype(jnp.int32)
    active = active.reshape(B, S, 1)

    logits_pad, loss_row = fused_forward(packed, emb, mask_bias, active)
    logits = logits_pad[..., :NUM_LABELS]
    if labels is None:
        return logits

    total = loss_row[0, 0]
    count = loss_row[0, 1]
    loss = total / jnp.maximum(count, 1.0)
    return logits, loss


# ----------------------------- main --------------------------------------------
if __name__ == "__main__":
    key = jax.random.PRNGKey(0)
    kp, ki, kl = jax.random.split(key, 3)

    params = init_params(kp)
    packed = pack_params(params)

    input_ids = jax.random.randint(ki, (B, S), 0, VOCAB, dtype=jnp.int32)
    attention_mask = jnp.array([[1, 1, 1, 1, 1, 1, 1, 1],
                                [1, 1, 1, 1, 1, 0, 0, 0]], dtype=jnp.int32)
    labels = jax.random.randint(kl, (B, S), 0, NUM_LABELS, dtype=jnp.int32)

    logits, loss = bert_for_nmt_forward(params, packed, input_ids,
                                        attention_mask, labels)
    jax.block_until_ready((logits, loss))

    assert logits.shape == (B, S, NUM_LABELS)
    assert bool(jnp.isfinite(loss))
    print("KERNEL_OK")
</pallas_src>

<mosaic_0001>
module attributes {stable_mosaic.version = 11 : i64} {
  func.func @fused_bert_kernel(%arg0: memref<2x8x32xf32, #tpu.memory_space<vmem>>, %arg1: memref<2x1x8xf32, #tpu.memory_space<vmem>>, %arg2: memref<2x8x1xi32, #tpu.memory_space<vmem>>, %arg3: memref<1x32xf32, #tpu.memory_space<vmem>>, %arg4: memref<1x32xf32, #tpu.memory_space<vmem>>, %arg5: memref<2x32x96xbf16, #tpu.memory_space<vmem>>, %arg6: memref<2x1x96xf32, #tpu.memory_space<vmem>>, %arg7: memref<2x2x16x32xbf16, #tpu.memory_space<vmem>>, %arg8: memref<2x1x32xf32, #tpu.memory_space<vmem>>, %arg9: memref<2x1x32xf32, #tpu.memory_space<vmem>>, %arg10: memref<2x1x32xf32, #tpu.memory_space<vmem>>, %arg11: memref<2x32x64xbf16, #tpu.memory_space<vmem>>, %arg12: memref<2x1x64xf32, #tpu.memory_space<vmem>>, %arg13: memref<2x64x32xbf16, #tpu.memory_space<vmem>>, %arg14: memref<2x1x32xf32, #tpu.memory_space<vmem>>, %arg15: memref<2x1x32xf32, #tpu.memory_space<vmem>>, %arg16: memref<2x1x32xf32, #tpu.memory_space<vmem>>, %arg17: memref<32x128xbf16, #tpu.memory_space<vmem>>, %arg18: memref<1x128xf32, #tpu.memory_space<vmem>>, %arg19: memref<2x8x128xf32, #tpu.memory_space<vmem>>, %arg20: memref<1x128xf32, #tpu.memory_space<vmem>>) attributes {dimension_semantics = [], scalar_prefetch = 0 : i64, scratch_operands = 0 : i64, tpu.core_type = #tpu.core_type<tc>} {
    %c0 = arith.constant 0 : index
    %c0_0 = arith.constant 0 : index
    %c0_1 = arith.constant 0 : index
    %0 = vector.load %arg0[%c0, %c0_0, %c0_1] : memref<2x8x32xf32, #tpu.memory_space<vmem>>, vector<2x8x32xf32>
    %1 = vector.shape_cast %0 : vector<2x8x32xf32> to vector<16x32xf32>
    %c0_2 = arith.constant 0 : index
    %c0_3 = arith.constant 0 : index
    %2 = vector.load %arg3[%c0_2, %c0_3] : memref<1x32xf32, #tpu.memory_space<vmem>>, vector<1x32xf32>
    %c0_4 = arith.constant 0 : index
    %c0_5 = arith.constant 0 : index
    %3 = vector.load %arg4[%c0_4, %c0_5] : memref<1x32xf32, #tpu.memory_space<vmem>>, vector<1x32xf32>
    %cst = arith.constant dense<0.000000e+00> : vector<16xf32>
    %4 = vector.multi_reduction <add>, %1, %cst [1] : vector<16x32xf32> to vector<16xf32>
    %5 = vector.shape_cast %4 : vector<16xf32> to vector<16x1xf32>
    %cst_6 = arith.constant 3.200000e+01 : f32
    %6 = vector.broadcast %cst_6 : f32 to vector<16x1xf32>
    %7 = arith.divf %5, %6 : vector<16x1xf32>
    %8 = vector.broadcast %7 : vector<16x1xf32> to vector<16x32xf32>
    %9 = arith.subf %1, %8 : vector<16x32xf32>
    %10 = arith.mulf %9, %9 : vector<16x32xf32>
    %cst_7 = arith.constant dense<0.000000e+00> : vector<16xf32>
    %11 = vector.multi_reduction <add>, %10, %cst_7 [1] : vector<16x32xf32> to vector<16xf32>
    %12 = vector.shape_cast %11 : vector<16xf32> to vector<16x1xf32>
    %cst_8 = arith.constant 3.200000e+01 : f32
    %13 = vector.broadcast %cst_8 : f32 to vector<16x1xf32>
    %14 = arith.divf %12, %13 : vector<16x1xf32>
    %15 = vector.broadcast %7 : vector<16x1xf32> to vector<16x32xf32>
    %16 = arith.subf %1, %15 : vector<16x32xf32>
    %cst_9 = arith.constant 9.99999996E-13 : f32
    %17 = vector.broadcast %cst_9 : f32 to vector<16x1xf32>
    %18 = arith.addf %14, %17 : vector<16x1xf32>
    %19 = math.rsqrt %18 : vector<16x1xf32>
    %20 = vector.broadcast %19 : vector<16x1xf32> to vector<16x32xf32>
    %21 = arith.mulf %16, %20 : vector<16x32xf32>
    %22 = vector.broadcast %2 : vector<1x32xf32> to vector<16x32xf32>
    %23 = arith.mulf %21, %22 : vector<16x32xf32>
    %24 = vector.broadcast %3 : vector<1x32xf32> to vector<16x32xf32>
    %25 = arith.addf %23, %24 : vector<16x32xf32>
    %c0_10 = arith.constant 0 : index
    %c0_11 = arith.constant 0 : index
    %c0_12 = arith.constant 0 : index
    %26 = vector.load %arg1[%c0_10, %c0_11, %c0_12] : memref<2x1x8xf32, #tpu.memory_space<vmem>>, vector<2x1x8xf32>
    %cst_13 = arith.constant 1.000000e+00 : f32
    %27 = vector.broadcast %cst_13 : f32 to vector<2x1x8xf32>
    %28 = arith.subf %26, %27 : vector<2x1x8xf32>
    %cst_14 = arith.constant 1.000000e+09 : f32
    %29 = vector.broadcast %cst_14 : f32 to vector<2x1x8xf32>
    %30 = arith.mulf %28, %29 : vector<2x1x8xf32>
    %c0_15 = arith.constant 0 : index
    %c0_16 = arith.constant 0 : index
    %c0_17 = arith.constant 0 : index
    %31 = vector.load %arg5[%c0_15, %c0_16, %c0_17] : memref<2x32x96xbf16, #tpu.memory_space<vmem>>, vector<1x32x96xbf16>
    %32 = vector.shape_cast %31 : vector<1x32x96xbf16> to vector<32x96xbf16>
    %c0_18 = arith.constant 0 : index
    %c0_19 = arith.constant 0 : index
    %c0_20 = arith.constant 0 : index
    %c0_21 = arith.constant 0 : index
    %33 = vector.load %arg7[%c0_18, %c0_19, %c0_20, %c0_21] : memref<2x2x16x32xbf16, #tpu.memory_space<vmem>>, vector<1x2x16x32xbf16>
    %34 = vector.shape_cast %33 : vector<1x2x16x32xbf16> to vector<2x16x32xbf16>
    %35 = arith.truncf %25 : vector<16x32xf32> to vector<16x32xbf16>
    %cst_22 = arith.constant dense<0.000000e+00> : vector<16x96xf32>
    %36 = tpu.matmul %35, %32, %cst_22 {dimension_numbers = #tpu.dot_dimension_numbers<[1], [0], [0], [1], [0, 0, 1, 1], [], []>} : vector<16x32xbf16>, vector<32x96xbf16>, vector<16x96xf32> -> vector<16x96xf32>
    %c0_23 = arith.constant 0 : index
    %c0_24 = arith.constant 0 : index
    %c0_25 = arith.constant 0 : index
    %37 = vector.load %arg6[%c0_23, %c0_24, %c0_25] : memref<2x1x96xf32, #tpu.memory_space<vmem>>, vector<1x1x96xf32>
    %38 = vector.shape_cast %37 : vector<1x1x96xf32> to vector<1x96xf32>
    %39 = vector.broadcast %38 : vector<1x96xf32> to vector<16x96xf32>
    %40 = arith.addf %36, %39 : vector<16x96xf32>
    %41 = vector.extract_strided_slice %40 {offsets = [0, 0], sizes = [8, 96], strides = [1, 1]} : vector<16x96xf32> to vector<8x96xf32>
    %42 = vector.extract_strided_slice %30 {offsets = [0, 0, 0], sizes = [1, 1, 8], strides = [1, 1, 1]} : vector<2x1x8xf32> to vector<1x1x8xf32>
    %43 = vector.shape_cast %42 : vector<1x1x8xf32> to vector<1x8xf32>
    %cst_26 = arith.constant 0.000000e+00 : f32
    %44 = vector.broadcast %cst_26 : f32 to vector<8x32xf32>
    %45 = vector.extract_strided_slice %41 {offsets = [0, 0], sizes = [8, 16], strides = [1, 1]} : vector<8x96xf32> to vector<8x16xf32>
    %46 = arith.truncf %45 : vector<8x16xf32> to vector<8x16xbf16>
    %47 = vector.extract_strided_slice %41 {offsets = [0, 32], sizes = [8, 16], strides = [1, 1]} : vector<8x96xf32> to vector<8x16xf32>
    %48 = arith.truncf %47 : vector<8x16xf32> to vector<8x16xbf16>
    %49 = vector.extract_strided_slice %41 {offsets = [0, 64], sizes = [8, 16], strides = [1, 1]} : vector<8x96xf32> to vector<8x16xf32>
    %50 = arith.truncf %49 : vector<8x16xf32> to vector<8x16xbf16>
    %cst_27 = arith.constant dense<0.000000e+00> : vector<8x8xf32>
    %51 = tpu.matmul %46, %48, %cst_27 {dimension_numbers = #tpu.dot_dimension_numbers<[1], [1], [0], [0], [0, 0, 1, 0], [], []>} : vector<8x16xbf16>, vector<8x16xbf16>, vector<8x8xf32> -> vector<8x8xf32>
    %52 = vector.broadcast %43 : vector<1x8xf32> to vector<8x8xf32>
    %53 = arith.addf %51, %52 : vector<8x8xf32>
    %cst_28 = arith.constant dense<0xFF800000> : vector<8xf32>
    %54 = vector.multi_reduction <maximumf>, %53, %cst_28 [1] : vector<8x8xf32> to vector<8xf32>
    %55 = vector.shape_cast %54 : vector<8xf32> to vector<8x1xf32>
    %56 = vector.broadcast %55 : vector<8x1xf32> to vector<8x8xf32>
    %57 = arith.subf %53, %56 : vector<8x8xf32>
    %58 = math.exp %57 : vector<8x8xf32>
    %cst_29 = arith.constant dense<0.000000e+00> : vector<8xf32>
    %59 = vector.multi_reduction <add>, %58, %cst_29 [1] : vector<8x8xf32> to vector<8xf32>
    %60 = vector.shape_cast %59 : vector<8xf32> to vector<8x1xf32>
    %61 = tpu.reciprocal %60 {approx = true} : vector<8x1xf32> -> vector<8x1xf32>
    %62 = vector.broadcast %61 : vector<8x1xf32> to vector<8x8xf32>
    %63 = arith.mulf %58, %62 : vector<8x8xf32>
    %64 = arith.truncf %63 : vector<8x8xf32> to vector<8x8xbf16>
    %cst_30 = arith.constant dense<0.000000e+00> : vector<8x16xf32>
    %65 = tpu.matmul %64, %50, %cst_30 {dimension_numbers = #tpu.dot_dimension_numbers<[1], [0], [0], [1], [0, 0, 1, 1], [], []>} : vector<8x8xbf16>, vector<8x16xbf16>, vector<8x16xf32> -> vector<8x16xf32>
    %66 = arith.truncf %65 : vector<8x16xf32> to vector<8x16xbf16>
    %67 = vector.extract_strided_slice %34 {offsets = [0, 0, 0], sizes = [1, 16, 32], strides = [1, 1, 1]} : vector<2x16x32xbf16> to vector<1x16x32xbf16>
    %68 = vector.shape_cast %67 : vector<1x16x32xbf16> to vector<16x32xbf16>
    %cst_31 = arith.constant dense<0.000000e+00> : vector<8x32xf32>
    %69 = tpu.matmul %66, %68, %cst_31 {dimension_numbers = #tpu.dot_dimension_numbers<[1], [0], [0], [1], [0, 0, 1, 1], [], []>} : vector<8x16xbf16>, vector<16x32xbf16>, vector<8x32xf32> -> vector<8x32xf32>
    %70 = arith.addf %44, %69 : vector<8x32xf32>
    %71 = vector.extract_strided_slice %41 {offsets = [0, 16], sizes = [8, 16], strides = [1, 1]} : vector<8x96xf32> to vector<8x16xf32>
    %72 = arith.truncf %71 : vector<8x16xf32> to vector<8x16xbf16>
    %73 = vector.extract_strided_slice %41 {offsets = [0, 48], sizes = [8, 16], strides = [1, 1]} : vector<8x96xf32> to vector<8x16xf32>
    %74 = arith.truncf %73 : vector<8x16xf32> to vector<8x16xbf16>
    %75 = vector.extract_strided_slice %41 {offsets = [0, 80], sizes = [8, 16], strides = [1, 1]} : vector<8x96xf32> to vector<8x16xf32>
    %76 = arith.truncf %75 : vector<8x16xf32> to vector<8x16xbf16>
    %cst_32 = arith.constant dense<0.000000e+00> : vector<8x8xf32>
    %77 = tpu.matmul %72, %74, %cst_32 {dimension_numbers = #tpu.dot_dimension_numbers<[1], [1], [0], [0], [0, 0, 1, 0], [], []>} : vector<8x16xbf16>, vector<8x16xbf16>, vector<8x8xf32> -> vector<8x8xf32>
    %78 = vector.broadcast %43 : vector<1x8xf32> to vector<8x8xf32>
    %79 = arith.addf %77, %78 : vector<8x8xf32>
    %cst_33 = arith.constant dense<0xFF800000> : vector<8xf32>
    %80 = vector.multi_reduction <maximumf>, %79, %cst_33 [1] : vector<8x8xf32> to vector<8xf32>
    %81 = vector.shape_cast %80 : vector<8xf32> to vector<8x1xf32>
    %82 = vector.broadcast %81 : vector<8x1xf32> to vector<8x8xf32>
    %83 = arith.subf %79, %82 : vector<8x8xf32>
    %84 = math.exp %83 : vector<8x8xf32>
    %cst_34 = arith.constant dense<0.000000e+00> : vector<8xf32>
    %85 = vector.multi_reduction <add>, %84, %cst_34 [1] : vector<8x8xf32> to vector<8xf32>
    %86 = vector.shape_cast %85 : vector<8xf32> to vector<8x1xf32>
    %87 = tpu.reciprocal %86 {approx = true} : vector<8x1xf32> -> vector<8x1xf32>
    %88 = vector.broadcast %87 : vector<8x1xf32> to vector<8x8xf32>
    %89 = arith.mulf %84, %88 : vector<8x8xf32>
    %90 = arith.truncf %89 : vector<8x8xf32> to vector<8x8xbf16>
    %cst_35 = arith.constant dense<0.000000e+00> : vector<8x16xf32>
    %91 = tpu.matmul %90, %76, %cst_35 {dimension_numbers = #tpu.dot_dimension_numbers<[1], [0], [0], [1], [0, 0, 1, 1], [], []>} : vector<8x8xbf16>, vector<8x16xbf16>, vector<8x16xf32> -> vector<8x16xf32>
    %92 = arith.truncf %91 : vector<8x16xf32> to vector<8x16xbf16>
    %93 = vector.extract_strided_slice %34 {offsets = [1, 0, 0], sizes = [1, 16, 32], strides = [1, 1, 1]} : vector<2x16x32xbf16> to vector<1x16x32xbf16>
    %94 = vector.shape_cast %93 : vector<1x16x32xbf16> to vector<16x32xbf16>
    %cst_36 = arith.constant dense<0.000000e+00> : vector<8x32xf32>
    %95 = tpu.matmul %92, %94, %cst_36 {dimension_numbers = #tpu.dot_dimension_numbers<[1], [0], [0], [1], [0, 0, 1, 1], [], []>} : vector<8x16xbf16>, vector<16x32xbf16>, vector<8x32xf32> -> vector<8x32xf32>
    %96 = arith.addf %70, %95 : vector<8x32xf32>
    %97 = vector.extract_strided_slice %40 {offsets = [8, 0], sizes = [8, 96], strides = [1, 1]} : vector<16x96xf32> to vector<8x96xf32>
    %98 = vector.extract_strided_slice %30 {offsets = [1, 0, 0], sizes = [1, 1, 8], strides = [1, 1, 1]} : vector<2x1x8xf32> to vector<1x1x8xf32>
    %99 = vector.shape_cast %98 : vector<1x1x8xf32> to vector<1x8xf32>
    %cst_37 = arith.constant 0.000000e+00 : f32
    %100 = vector.broadcast %cst_37 : f32 to vector<8x32xf32>
    %101 = vector.extract_strided_slice %97 {offsets = [0, 0], sizes = [8, 16], strides = [1, 1]} : vector<8x96xf32> to vector<8x16xf32>
    %102 = arith.truncf %101 : vector<8x16xf32> to vector<8x16xbf16>
    %103 = vector.extract_strided_slice %97 {offsets = [0, 32], sizes = [8, 16], strides = [1, 1]} : vector<8x96xf32> to vector<8x16xf32>
    %104 = arith.truncf %103 : vector<8x16xf32> to vector<8x16xbf16>
    %105 = vector.extract_strided_slice %97 {offsets = [0, 64], sizes = [8, 16], strides = [1, 1]} : vector<8x96xf32> to vector<8x16xf32>
    %106 = arith.truncf %105 : vector<8x16xf32> to vector<8x16xbf16>
    %cst_38 = arith.constant dense<0.000000e+00> : vector<8x8xf32>
    %107 = tpu.matmul %102, %104, %cst_38 {dimension_numbers = #tpu.dot_dimension_numbers<[1], [1], [0], [0], [0, 0, 1, 0], [], []>} : vector<8x16xbf16>, vector<8x16xbf16>, vector<8x8xf32> -> vector<8x8xf32>
    %108 = vector.broadcast %99 : vector<1x8xf32> to vector<8x8xf32>
    %109 = arith.addf %107, %108 : vector<8x8xf32>
    %cst_39 = arith.constant dense<0xFF800000> : vector<8xf32>
    %110 = vector.multi_reduction <maximumf>, %109, %cst_39 [1] : vector<8x8xf32> to vector<8xf32>
    %111 = vector.shape_cast %110 : vector<8xf32> to vector<8x1xf32>
    %112 = vector.broadcast %111 : vector<8x1xf32> to vector<8x8xf32>
    %113 = arith.subf %109, %112 : vector<8x8xf32>
    %114 = math.exp %113 : vector<8x8xf32>
    %cst_40 = arith.constant dense<0.000000e+00> : vector<8xf32>
    %115 = vector.multi_reduction <add>, %114, %cst_40 [1] : vector<8x8xf32> to vector<8xf32>
    %116 = vector.shape_cast %115 : vector<8xf32> to vector<8x1xf32>
    %117 = tpu.reciprocal %116 {approx = true} : vector<8x1xf32> -> vector<8x1xf32>
    %118 = vector.broadcast %117 : vector<8x1xf32> to vector<8x8xf32>
    %119 = arith.mulf %114, %118 : vector<8x8xf32>
    %120 = arith.truncf %119 : vector<8x8xf32> to vector<8x8xbf16>
    %cst_41 = arith.constant dense<0.000000e+00> : vector<8x16xf32>
    %121 = tpu.matmul %120, %106, %cst_41 {dimension_numbers = #tpu.dot_dimension_numbers<[1], [0], [0], [1], [0, 0, 1, 1], [], []>} : vector<8x8xbf16>, vector<8x16xbf16>, vector<8x16xf32> -> vector<8x16xf32>
    %122 = arith.truncf %121 : vector<8x16xf32> to vector<8x16xbf16>
    %123 = vector.extract_strided_slice %34 {offsets = [0, 0, 0], sizes = [1, 16, 32], strides = [1, 1, 1]} : vector<2x16x32xbf16> to vector<1x16x32xbf16>
    %124 = vector.shape_cast %123 : vector<1x16x32xbf16> to vector<16x32xbf16>
    %cst_42 = arith.constant dense<0.000000e+00> : vector<8x32xf32>
    %125 = tpu.matmul %122, %124, %cst_42 {dimension_numbers = #tpu.dot_dimension_numbers<[1], [0], [0], [1], [0, 0, 1, 1], [], []>} : vector<8x16xbf16>, vector<16x32xbf16>, vector<8x32xf32> -> vector<8x32xf32>
    %126 = arith.addf %100, %125 : vector<8x32xf32>
    %127 = vector.extract_strided_slice %97 {offsets = [0, 16], sizes = [8, 16], strides = [1, 1]} : vector<8x96xf32> to vector<8x16xf32>
    %128 = arith.truncf %127 : vector<8x16xf32> to vector<8x16xbf16>
    %129 = vector.extract_strided_slice %97 {offsets = [0, 48], sizes = [8, 16], strides = [1, 1]} : vector<8x96xf32> to vector<8x16xf32>
    %130 = arith.truncf %129 : vector<8x16xf32> to vector<8x16xbf16>
    %131 = vector.extract_strided_slice %97 {offsets = [0, 80], sizes = [8, 16], strides = [1, 1]} : vector<8x96xf32> to vector<8x16xf32>
    %132 = arith.truncf %131 : vector<8x16xf32> to vector<8x16xbf16>
    %cst_43 = arith.constant dense<0.000000e+00> : vector<8x8xf32>
    %133 = tpu.matmul %128, %130, %cst_43 {dimension_numbers = #tpu.dot_dimension_numbers<[1], [1], [0], [0], [0, 0, 1, 0], [], []>} : vector<8x16xbf16>, vector<8x16xbf16>, vector<8x8xf32> -> vector<8x8xf32>
    %134 = vector.broadcast %99 : vector<1x8xf32> to vector<8x8xf32>
    %135 = arith.addf %133, %134 : vector<8x8xf32>
    %cst_44 = arith.constant dense<0xFF800000> : vector<8xf32>
    %136 = vector.multi_reduction <maximumf>, %135, %cst_44 [1] : vector<8x8xf32> to vector<8xf32>
    %137 = vector.shape_cast %136 : vector<8xf32> to vector<8x1xf32>
    %138 = vector.broadcast %137 : vector<8x1xf32> to vector<8x8xf32>
    %139 = arith.subf %135, %138 : vector<8x8xf32>
    %140 = math.exp %139 : vector<8x8xf32>
    %cst_45 = arith.constant dense<0.000000e+00> : vector<8xf32>
    %141 = vector.multi_reduction <add>, %140, %cst_45 [1] : vector<8x8xf32> to vector<8xf32>
    %142 = vector.shape_cast %141 : vector<8xf32> to vector<8x1xf32>
    %143 = tpu.reciprocal %142 {approx = true} : vector<8x1xf32> -> vector<8x1xf32>
    %144 = vector.broadcast %143 : vector<8x1xf32> to vector<8x8xf32>
    %145 = arith.mulf %140, %144 : vector<8x8xf32>
    %146 = arith.truncf %145 : vector<8x8xf32> to vector<8x8xbf16>
    %cst_46 = arith.constant dense<0.000000e+00> : vector<8x16xf32>
    %147 = tpu.matmul %146, %132, %cst_46 {dimension_numbers = #tpu.dot_dimension_numbers<[1], [0], [0], [1], [0, 0, 1, 1], [], []>} : vector<8x8xbf16>, vector<8x16xbf16>, vector<8x16xf32> -> vector<8x16xf32>
    %148 = arith.truncf %147 : vector<8x16xf32> to vector<8x16xbf16>
    %149 = vector.extract_strided_slice %34 {offsets = [1, 0, 0], sizes = [1, 16, 32], strides = [1, 1, 1]} : vector<2x16x32xbf16> to vector<1x16x32xbf16>
    %150 = vector.shape_cast %149 : vector<1x16x32xbf16> to vector<16x32xbf16>
    %cst_47 = arith.constant dense<0.000000e+00> : vector<8x32xf32>
    %151 = tpu.matmul %148, %150, %cst_47 {dimension_numbers = #tpu.dot_dimension_numbers<[1], [0], [0], [1], [0, 0, 1, 1], [], []>} : vector<8x16xbf16>, vector<16x32xbf16>, vector<8x32xf32> -> vector<8x32xf32>
    %152 = arith.addf %126, %151 : vector<8x32xf32>
    %153 = tpu.concatenate %96, %152 in 0 : vector<8x32xf32>, vector<8x32xf32> -> vector<16x32xf32>
    %c0_48 = arith.constant 0 : index
    %c0_49 = arith.constant 0 : index
    %c0_50 = arith.constant 0 : index
    %154 = vector.load %arg8[%c0_48, %c0_49, %c0_50] : memref<2x1x32xf32, #tpu.memory_space<vmem>>, vector<1x1x32xf32>
    %155 = vector.shape_cast %154 : vector<1x1x32xf32> to vector<1x32xf32>
    %156 = vector.broadcast %155 : vector<1x32xf32> to vector<16x32xf32>
    %157 = arith.addf %153, %156 : vector<16x32xf32>
    %158 = arith.addf %25, %157 : vector<16x32xf32>
    %c0_51 = arith.constant 0 : index
    %c0_52 = arith.constant 0 : index
    %c0_53 = arith.constant 0 : index
    %159 = vector.load %arg9[%c0_51, %c0_52, %c0_53] : memref<2x1x32xf32, #tpu.memory_space<vmem>>, vector<1x1x32xf32>
    %160 = vector.shape_cast %159 : vector<1x1x32xf32> to vector<1x32xf32>
    %c0_54 = arith.constant 0 : index
    %c0_55 = arith.constant 0 : index
    %c0_56 = arith.constant 0 : index
    %161 = vector.load %arg10[%c0_54, %c0_55, %c0_56] : memref<2x1x32xf32, #tpu.memory_space<vmem>>, vector<1x1x32xf32>
    %162 = vector.shape_cast %161 : vector<1x1x32xf32> to vector<1x32xf32>
    %cst_57 = arith.constant dense<0.000000e+00> : vector<16xf32>
    %163 = vector.multi_reduction <add>, %158, %cst_57 [1] : vector<16x32xf32> to vector<16xf32>
    %164 = vector.shape_cast %163 : vector<16xf32> to vector<16x1xf32>
    %cst_58 = arith.constant 3.200000e+01 : f32
    %165 = vector.broadcast %cst_58 : f32 to vector<16x1xf32>
    %166 = arith.divf %164, %165 : vector<16x1xf32>
    %167 = vector.broadcast %166 : vector<16x1xf32> to vector<16x32xf32>
    %168 = arith.subf %158, %167 : vector<16x32xf32>
    %169 = arith.mulf %168, %168 : vector<16x32xf32>
    %cst_59 = arith.constant dense<0.000000e+00> : vector<16xf32>
    %170 = vector.multi_reduction <add>, %169, %cst_59 [1] : vector<16x32xf32> to vector<16xf32>
    %171 = vector.shape_cast %170 : vector<16xf32> to vector<16x1xf32>
    %cst_60 = arith.constant 3.200000e+01 : f32
    %172 = vector.broadcast %cst_60 : f32 to vector<16x1xf32>
    %173 = arith.divf %171, %172 : vector<16x1xf32>
    %174 = vector.broadcast %166 : vector<16x1xf32> to vector<16x32xf32>
    %175 = arith.subf %158, %174 : vector<16x32xf32>
    %cst_61 = arith.constant 9.99999996E-13 : f32
    %176 = vector.broadcast %cst_61 : f32 to vector<16x1xf32>
    %177 = arith.addf %173, %176 : vector<16x1xf32>
    %178 = math.rsqrt %177 : vector<16x1xf32>
    %179 = vector.broadcast %178 : vector<16x1xf32> to vector<16x32xf32>
    %180 = arith.mulf %175, %179 : vector<16x32xf32>
    %181 = vector.broadcast %160 : vector<1x32xf32> to vector<16x32xf32>
    %182 = arith.mulf %180, %181 : vector<16x32xf32>
    %183 = vector.broadcast %162 : vector<1x32xf32> to vector<16x32xf32>
    %184 = arith.addf %182, %183 : vector<16x32xf32>
    %185 = arith.truncf %184 : vector<16x32xf32> to vector<16x32xbf16>
    %c0_62 = arith.constant 0 : index
    %c0_63 = arith.constant 0 : index
    %c0_64 = arith.constant 0 : index
    %186 = vector.load %arg11[%c0_62, %c0_63, %c0_64] : memref<2x32x64xbf16, #tpu.memory_space<vmem>>, vector<1x32x64xbf16>
    %187 = vector.shape_cast %186 : vector<1x32x64xbf16> to vector<32x64xbf16>
    %cst_65 = arith.constant dense<0.000000e+00> : vector<16x64xf32>
    %188 = tpu.matmul %185, %187, %cst_65 {dimension_numbers = #tpu.dot_dimension_numbers<[1], [0], [0], [1], [0, 0, 1, 1], [], []>} : vector<16x32xbf16>, vector<32x64xbf16>, vector<16x64xf32> -> vector<16x64xf32>
    %c0_66 = arith.constant 0 : index
    %c0_67 = arith.constant 0 : index
    %c0_68 = arith.constant 0 : index
    %189 = vector.load %arg12[%c0_66, %c0_67, %c0_68] : memref<2x1x64xf32, #tpu.memory_space<vmem>>, vector<1x1x64xf32>
    %190 = vector.shape_cast %189 : vector<1x1x64xf32> to vector<1x64xf32>
    %191 = vector.broadcast %190 : vector<1x64xf32> to vector<16x64xf32>
    %192 = arith.addf %188, %191 : vector<16x64xf32>
    %cst_69 = arith.constant 5.000000e-01 : f32
    %193 = vector.broadcast %cst_69 : f32 to vector<16x64xf32>
    %194 = arith.mulf %193, %192 : vector<16x64xf32>
    %cst_70 = arith.constant 4.471500e-02 : f32
    %195 = vector.broadcast %cst_70 : f32 to vector<16x64xf32>
    %196 = arith.mulf %195, %192 : vector<16x64xf32>
    %197 = arith.mulf %196, %192 : vector<16x64xf32>
    %198 = arith.mulf %197, %192 : vector<16x64xf32>
    %199 = arith.addf %192, %198 : vector<16x64xf32>
    %cst_71 = arith.constant 0.797884583 : f32
    %200 = vector.broadcast %cst_71 : f32 to vector<16x64xf32>
    %201 = arith.mulf %200, %199 : vector<16x64xf32>
    %202 = math.tanh %201 : vector<16x64xf32>
    %cst_72 = arith.constant 1.000000e+00 : f32
    %203 = vector.broadcast %cst_72 : f32 to vector<16x64xf32>
    %204 = arith.addf %203, %202 : vector<16x64xf32>
    %205 = arith.mulf %194, %204 : vector<16x64xf32>
    %206 = arith.truncf %205 : vector<16x64xf32> to vector<16x64xbf16>
    %c0_73 = arith.constant 0 : index
    %c0_74 = arith.constant 0 : index
    %c0_75 = arith.constant 0 : index
    %207 = vector.load %arg13[%c0_73, %c0_74, %c0_75] : memref<2x64x32xbf16, #tpu.memory_space<vmem>>, vector<1x64x32xbf16>
    %208 = vector.shape_cast %207 : vector<1x64x32xbf16> to vector<64x32xbf16>
    %cst_76 = arith.constant dense<0.000000e+00> : vector<16x32xf32>
    %209 = tpu.matmul %206, %208, %cst_76 {dimension_numbers = #tpu.dot_dimension_numbers<[1], [0], [0], [1], [0, 0, 1, 1], [], []>} : vector<16x64xbf16>, vector<64x32xbf16>, vector<16x32xf32> -> vector<16x32xf32>
    %c0_77 = arith.constant 0 : index
    %c0_78 = arith.constant 0 : index
    %c0_79 = arith.constant 0 : index
    %210 = vector.load %arg14[%c0_77, %c0_78, %c0_79] : memref<2x1x32xf32, #tpu.memory_space<vmem>>, vector<1x1x32xf32>
    %211 = vector.shape_cast %210 : vector<1x1x32xf32> to vector<1x32xf32>
    %212 = vector.broadcast %211 : vector<1x32xf32> to vector<16x32xf32>
    %213 = arith.addf %209, %212 : vector<16x32xf32>
    %214 = arith.addf %184, %213 : vector<16x32xf32>
    %c0_80 = arith.constant 0 : index
    %c0_81 = arith.constant 0 : index
    %c0_82 = arith.constant 0 : index
    %215 = vector.load %arg15[%c0_80, %c0_81, %c0_82] : memref<2x1x32xf32, #tpu.memory_space<vmem>>, vector<1x1x32xf32>
    %216 = vector.shape_cast %215 : vector<1x1x32xf32> to vector<1x32xf32>
    %c0_83 = arith.constant 0 : index
    %c0_84 = arith.constant 0 : index
    %c0_85 = arith.constant 0 : index
    %217 = vector.load %arg16[%c0_83, %c0_84, %c0_85] : memref<2x1x32xf32, #tpu.memory_space<vmem>>, vector<1x1x32xf32>
    %218 = vector.shape_cast %217 : vector<1x1x32xf32> to vector<1x32xf32>
    %cst_86 = arith.constant dense<0.000000e+00> : vector<16xf32>
    %219 = vector.multi_reduction <add>, %214, %cst_86 [1] : vector<16x32xf32> to vector<16xf32>
    %220 = vector.shape_cast %219 : vector<16xf32> to vector<16x1xf32>
    %cst_87 = arith.constant 3.200000e+01 : f32
    %221 = vector.broadcast %cst_87 : f32 to vector<16x1xf32>
    %222 = arith.divf %220, %221 : vector<16x1xf32>
    %223 = vector.broadcast %222 : vector<16x1xf32> to vector<16x32xf32>
    %224 = arith.subf %214, %223 : vector<16x32xf32>
    %225 = arith.mulf %224, %224 : vector<16x32xf32>
    %cst_88 = arith.constant dense<0.000000e+00> : vector<16xf32>
    %226 = vector.multi_reduction <add>, %225, %cst_88 [1] : vector<16x32xf32> to vector<16xf32>
    %227 = vector.shape_cast %226 : vector<16xf32> to vector<16x1xf32>
    %cst_89 = arith.constant 3.200000e+01 : f32
    %228 = vector.broadcast %cst_89 : f32 to vector<16x1xf32>
    %229 = arith.divf %227, %228 : vector<16x1xf32>
    %230 = vector.broadcast %222 : vector<16x1xf32> to vector<16x32xf32>
    %231 = arith.subf %214, %230 : vector<16x32xf32>
    %cst_90 = arith.constant 9.99999996E-13 : f32
    %232 = vector.broadcast %cst_90 : f32 to vector<16x1xf32>
    %233 = arith.addf %229, %232 : vector<16x1xf32>
    %234 = math.rsqrt %233 : vector<16x1xf32>
    %235 = vector.broadcast %234 : vector<16x1xf32> to vector<16x32xf32>
    %236 = arith.mulf %231, %235 : vector<16x32xf32>
    %237 = vector.broadcast %216 : vector<1x32xf32> to vector<16x32xf32>
    %238 = arith.mulf %236, %237 : vector<16x32xf32>
    %239 = vector.broadcast %218 : vector<1x32xf32> to vector<16x32xf32>
    %240 = arith.addf %238, %239 : vector<16x32xf32>
    %c1 = arith.constant 1 : index
    %c0_91 = arith.constant 0 : index
    %c0_92 = arith.constant 0 : index
    %241 = vector.load %arg5[%c1, %c0_91, %c0_92] : memref<2x32x96xbf16, #tpu.memory_space<vmem>>, vector<1x32x96xbf16>
    %242 = vector.shape_cast %241 : vector<1x32x96xbf16> to vector<32x96xbf16>
    %c1_93 = arith.constant 1 : index
    %c0_94 = arith.constant 0 : index
    %c0_95 = arith.constant 0 : index
    %c0_96 = arith.constant 0 : index
    %243 = vector.load %arg7[%c1_93, %c0_94, %c0_95, %c0_96] : memref<2x2x16x32xbf16, #tpu.memory_space<vmem>>, vector<1x2x16x32xbf16>
    %244 = vector.shape_cast %243 : vector<1x2x16x32xbf16> to vector<2x16x32xbf16>
    %245 = arith.truncf %240 : vector<16x32xf32> to vector<16x32xbf16>
    %cst_97 = arith.constant dense<0.000000e+00> : vector<16x96xf32>
    %246 = tpu.matmul %245, %242, %cst_97 {dimension_numbers = #tpu.dot_dimension_numbers<[1], [0], [0], [1], [0, 0, 1, 1], [], []>} : vector<16x32xbf16>, vector<32x96xbf16>, vector<16x96xf32> -> vector<16x96xf32>
    %c1_98 = arith.constant 1 : index
    %c0_99 = arith.constant 0 : index
    %c0_100 = arith.constant 0 : index
    %247 = vector.load %arg6[%c1_98, %c0_99, %c0_100] : memref<2x1x96xf32, #tpu.memory_space<vmem>>, vector<1x1x96xf32>
    %248 = vector.shape_cast %247 : vector<1x1x96xf32> to vector<1x96xf32>
    %249 = vector.broadcast %248 : vector<1x96xf32> to vector<16x96xf32>
    %250 = arith.addf %246, %249 : vector<16x96xf32>
    %251 = vector.extract_strided_slice %250 {offsets = [0, 0], sizes = [8, 96], strides = [1, 1]} : vector<16x96xf32> to vector<8x96xf32>
    %252 = vector.extract_strided_slice %30 {offsets = [0, 0, 0], sizes = [1, 1, 8], strides = [1, 1, 1]} : vector<2x1x8xf32> to vector<1x1x8xf32>
    %253 = vector.shape_cast %252 : vector<1x1x8xf32> to vector<1x8xf32>
    %cst_101 = arith.constant 0.000000e+00 : f32
    %254 = vector.broadcast %cst_101 : f32 to vector<8x32xf32>
    %255 = vector.extract_strided_slice %251 {offsets = [0, 0], sizes = [8, 16], strides = [1, 1]} : vector<8x96xf32> to vector<8x16xf32>
    %256 = arith.truncf %255 : vector<8x16xf32> to vector<8x16xbf16>
    %257 = vector.extract_strided_slice %251 {offsets = [0, 32], sizes = [8, 16], strides = [1, 1]} : vector<8x96xf32> to vector<8x16xf32>
    %258 = arith.truncf %257 : vector<8x16xf32> to vector<8x16xbf16>
    %259 = vector.extract_strided_slice %251 {offsets = [0, 64], sizes = [8, 16], strides = [1, 1]} : vector<8x96xf32> to vector<8x16xf32>
    %260 = arith.truncf %259 : vector<8x16xf32> to vector<8x16xbf16>
    %cst_102 = arith.constant dense<0.000000e+00> : vector<8x8xf32>
    %261 = tpu.matmul %256, %258, %cst_102 {dimension_numbers = #tpu.dot_dimension_numbers<[1], [1], [0], [0], [0, 0, 1, 0], [], []>} : vector<8x16xbf16>, vector<8x16xbf16>, vector<8x8xf32> -> vector<8x8xf32>
    %262 = vector.broadcast %253 : vector<1x8xf32> to vector<8x8xf32>
    %263 = arith.addf %261, %262 : vector<8x8xf32>
    %cst_103 = arith.constant dense<0xFF800000> : vector<8xf32>
    %264 = vector.multi_reduction <maximumf>, %263, %cst_103 [1] : vector<8x8xf32> to vector<8xf32>
    %265 = vector.shape_cast %264 : vector<8xf32> to vector<8x1xf32>
    %266 = vector.broadcast %265 : vector<8x1xf32> to vector<8x8xf32>
    %267 = arith.subf %263, %266 : vector<8x8xf32>
    %268 = math.exp %267 : vector<8x8xf32>
    %cst_104 = arith.constant dense<0.000000e+00> : vector<8xf32>
    %269 = vector.multi_reduction <add>, %268, %cst_104 [1] : vector<8x8xf32> to vector<8xf32>
    %270 = vector.shape_cast %269 : vector<8xf32> to vector<8x1xf32>
    %271 = tpu.reciprocal %270 {approx = true} : vector<8x1xf32> -> vector<8x1xf32>
    %272 = vector.broadcast %271 : vector<8x1xf32> to vector<8x8xf32>
    %273 = arith.mulf %268, %272 : vector<8x8xf32>
    %274 = arith.truncf %273 : vector<8x8xf32> to vector<8x8xbf16>
    %cst_105 = arith.constant dense<0.000000e+00> : vector<8x16xf32>
    %275 = tpu.matmul %274, %260, %cst_105 {dimension_numbers = #tpu.dot_dimension_numbers<[1], [0], [0], [1], [0, 0, 1, 1], [], []>} : vector<8x8xbf16>, vector<8x16xbf16>, vector<8x16xf32> -> vector<8x16xf32>
    %276 = arith.truncf %275 : vector<8x16xf32> to vector<8x16xbf16>
    %277 = vector.extract_strided_slice %244 {offsets = [0, 0, 0], sizes = [1, 16, 32], strides = [1, 1, 1]} : vector<2x16x32xbf16> to vector<1x16x32xbf16>
    %278 = vector.shape_cast %277 : vector<1x16x32xbf16> to vector<16x32xbf16>
    %cst_106 = arith.constant dense<0.000000e+00> : vector<8x32xf32>
    %279 = tpu.matmul %276, %278, %cst_106 {dimension_numbers = #tpu.dot_dimension_numbers<[1], [0], [0], [1], [0, 0, 1, 1], [], []>} : vector<8x16xbf16>, vector<16x32xbf16>, vector<8x32xf32> -> vector<8x32xf32>
    %280 = arith.addf %254, %279 : vector<8x32xf32>
    %281 = vector.extract_strided_slice %251 {offsets = [0, 16], sizes = [8, 16], strides = [1, 1]} : vector<8x96xf32> to vector<8x16xf32>
    %282 = arith.truncf %281 : vector<8x16xf32> to vector<8x16xbf16>
    %283 = vector.extract_strided_slice %251 {offsets = [0, 48], sizes = [8, 16], strides = [1, 1]} : vector<8x96xf32> to vector<8x16xf32>
    %284 = arith.truncf %283 : vector<8x16xf32> to vector<8x16xbf16>
    %285 = vector.extract_strided_slice %251 {offsets = [0, 80], sizes = [8, 16], strides = [1, 1]} : vector<8x96xf32> to vector<8x16xf32>
    %286 = arith.truncf %285 : vector<8x16xf32> to vector<8x16xbf16>
    %cst_107 = arith.constant dense<0.000000e+00> : vector<8x8xf32>
    %287 = tpu.matmul %282, %284, %cst_107 {dimension_numbers = #tpu.dot_dimension_numbers<[1], [1], [0], [0], [0, 0, 1, 0], [], []>} : vector<8x16xbf16>, vector<8x16xbf16>, vector<8x8xf32> -> vector<8x8xf32>
    %288 = vector.broadcast %253 : vector<1x8xf32> to vector<8x8xf32>
    %289 = arith.addf %287, %288 : vector<8x8xf32>
    %cst_108 = arith.constant dense<0xFF800000> : vector<8xf32>
    %290 = vector.multi_reduction <maximumf>, %289, %cst_108 [1] : vector<8x8xf32> to vector<8xf32>
    %291 = vector.shape_cast %290 : vector<8xf32> to vector<8x1xf32>
    %292 = vector.broadcast %291 : vector<8x1xf32> to vector<8x8xf32>
    %293 = arith.subf %289, %292 : vector<8x8xf32>
    %294 = math.exp %293 : vector<8x8xf32>
    %cst_109 = arith.constant dense<0.000000e+00> : vector<8xf32>
    %295 = vector.multi_reduction <add>, %294, %cst_109 [1] : vector<8x8xf32> to vector<8xf32>
    %296 = vector.shape_cast %295 : vector<8xf32> to vector<8x1xf32>
    %297 = tpu.reciprocal %296 {approx = true} : vector<8x1xf32> -> vector<8x1xf32>
    %298 = vector.broadcast %297 : vector<8x1xf32> to vector<8x8xf32>
    %299 = arith.mulf %294, %298 : vector<8x8xf32>
    %300 = arith.truncf %299 : vector<8x8xf32> to vector<8x8xbf16>
    %cst_110 = arith.constant dense<0.000000e+00> : vector<8x16xf32>
    %301 = tpu.matmul %300, %286, %cst_110 {dimension_numbers = #tpu.dot_dimension_numbers<[1], [0], [0], [1], [0, 0, 1, 1], [], []>} : vector<8x8xbf16>, vector<8x16xbf16>, vector<8x16xf32> -> vector<8x16xf32>
    %302 = arith.truncf %301 : vector<8x16xf32> to vector<8x16xbf16>
    %303 = vector.extract_strided_slice %244 {offsets = [1, 0, 0], sizes = [1, 16, 32], strides = [1, 1, 1]} : vector<2x16x32xbf16> to vector<1x16x32xbf16>
    %304 = vector.shape_cast %303 : vector<1x16x32xbf16> to vector<16x32xbf16>
    %cst_111 = arith.constant dense<0.000000e+00> : vector<8x32xf32>
    %305 = tpu.matmul %302, %304, %cst_111 {dimension_numbers = #tpu.dot_dimension_numbers<[1], [0], [0], [1], [0, 0, 1, 1], [], []>} : vector<8x16xbf16>, vector<16x32xbf16>, vector<8x32xf32> -> vector<8x32xf32>
    %306 = arith.addf %280, %305 : vector<8x32xf32>
    %307 = vector.extract_strided_slice %250 {offsets = [8, 0], sizes = [8, 96], strides = [1, 1]} : vector<16x96xf32> to vector<8x96xf32>
    %308 = vector.extract_strided_slice %30 {offsets = [1, 0, 0], sizes = [1, 1, 8], strides = [1, 1, 1]} : vector<2x1x8xf32> to vector<1x1x8xf32>
    %309 = vector.shape_cast %308 : vector<1x1x8xf32> to vector<1x8xf32>
    %cst_112 = arith.constant 0.000000e+00 : f32
    %310 = vector.broadcast %cst_112 : f32 to vector<8x32xf32>
    %311 = vector.extract_strided_slice %307 {offsets = [0, 0], sizes = [8, 16], strides = [1, 1]} : vector<8x96xf32> to vector<8x16xf32>
    %312 = arith.truncf %311 : vector<8x16xf32> to vector<8x16xbf16>
    %313 = vector.extract_strided_slice %307 {offsets = [0, 32], sizes = [8, 16], strides = [1, 1]} : vector<8x96xf32> to vector<8x16xf32>
    %314 = arith.truncf %313 : vector<8x16xf32> to vector<8x16xbf16>
    %315 = vector.extract_strided_slice %307 {offsets = [0, 64], sizes = [8, 16], strides = [1, 1]} : vector<8x96xf32> to vector<8x16xf32>
    %316 = arith.truncf %315 : vector<8x16xf32> to vector<8x16xbf16>
    %cst_113 = arith.constant dense<0.000000e+00> : vector<8x8xf32>
    %317 = tpu.matmul %312, %314, %cst_113 {dimension_numbers = #tpu.dot_dimension_numbers<[1], [1], [0], [0], [0, 0, 1, 0], [], []>} : vector<8x16xbf16>, vector<8x16xbf16>, vector<8x8xf32> -> vector<8x8xf32>
    %318 = vector.broadcast %309 : vector<1x8xf32> to vector<8x8xf32>
    %319 = arith.addf %317, %318 : vector<8x8xf32>
    %cst_114 = arith.constant dense<0xFF800000> : vector<8xf32>
    %320 = vector.multi_reduction <maximumf>, %319, %cst_114 [1] : vector<8x8xf32> to vector<8xf32>
    %321 = vector.shape_cast %320 : vector<8xf32> to vector<8x1xf32>
    %322 = vector.broadcast %321 : vector<8x1xf32> to vector<8x8xf32>
    %323 = arith.subf %319, %322 : vector<8x8xf32>
    %324 = math.exp %323 : vector<8x8xf32>
    %cst_115 = arith.constant dense<0.000000e+00> : vector<8xf32>
    %325 = vector.multi_reduction <add>, %324, %cst_115 [1] : vector<8x8xf32> to vector<8xf32>
    %326 = vector.shape_cast %325 : vector<8xf32> to vector<8x1xf32>
    %327 = tpu.reciprocal %326 {approx = true} : vector<8x1xf32> -> vector<8x1xf32>
    %328 = vector.broadcast %327 : vector<8x1xf32> to vector<8x8xf32>
    %329 = arith.mulf %324, %328 : vector<8x8xf32>
    %330 = arith.truncf %329 : vector<8x8xf32> to vector<8x8xbf16>
    %cst_116 = arith.constant dense<0.000000e+00> : vector<8x16xf32>
    %331 = tpu.matmul %330, %316, %cst_116 {dimension_numbers = #tpu.dot_dimension_numbers<[1], [0], [0], [1], [0, 0, 1, 1], [], []>} : vector<8x8xbf16>, vector<8x16xbf16>, vector<8x16xf32> -> vector<8x16xf32>
    %332 = arith.truncf %331 : vector<8x16xf32> to vector<8x16xbf16>
    %333 = vector.extract_strided_slice %244 {offsets = [0, 0, 0], sizes = [1, 16, 32], strides = [1, 1, 1]} : vector<2x16x32xbf16> to vector<1x16x32xbf16>
    %334 = vector.shape_cast %333 : vector<1x16x32xbf16> to vector<16x32xbf16>
    %cst_117 = arith.constant dense<0.000000e+00> : vector<8x32xf32>
    %335 = tpu.matmul %332, %334, %cst_117 {dimension_numbers = #tpu.dot_dimension_numbers<[1], [0], [0], [1], [0, 0, 1, 1], [], []>} : vector<8x16xbf16>, vector<16x32xbf16>, vector<8x32xf32> -> vector<8x32xf32>
    %336 = arith.addf %310, %335 : vector<8x32xf32>
    %337 = vector.extract_strided_slice %307 {offsets = [0, 16], sizes = [8, 16], strides = [1, 1]} : vector<8x96xf32> to vector<8x16xf32>
    %338 = arith.truncf %337 : vector<8x16xf32> to vector<8x16xbf16>
    %339 = vector.extract_strided_slice %307 {offsets = [0, 48], sizes = [8, 16], strides = [1, 1]} : vector<8x96xf32> to vector<8x16xf32>
    %340 = arith.truncf %339 : vector<8x16xf32> to vector<8x16xbf16>
    %341 = vector.extract_strided_slice %307 {offsets = [0, 80], sizes = [8, 16], strides = [1, 1]} : vector<8x96xf32> to vector<8x16xf32>
    %342 = arith.truncf %341 : vector<8x16xf32> to vector<8x16xbf16>
    %cst_118 = arith.constant dense<0.000000e+00> : vector<8x8xf32>
    %343 = tpu.matmul %338, %340, %cst_118 {dimension_numbers = #tpu.dot_dimension_numbers<[1], [1], [0], [0], [0, 0, 1, 0], [], []>} : vector<8x16xbf16>, vector<8x16xbf16>, vector<8x8xf32> -> vector<8x8xf32>
    %344 = vector.broadcast %309 : vector<1x8xf32> to vector<8x8xf32>
    %345 = arith.addf %343, %344 : vector<8x8xf32>
    %cst_119 = arith.constant dense<0xFF800000> : vector<8xf32>
    %346 = vector.multi_reduction <maximumf>, %345, %cst_119 [1] : vector<8x8xf32> to vector<8xf32>
    %347 = vector.shape_cast %346 : vector<8xf32> to vector<8x1xf32>
    %348 = vector.broadcast %347 : vector<8x1xf32> to vector<8x8xf32>
    %349 = arith.subf %345, %348 : vector<8x8xf32>
    %350 = math.exp %349 : vector<8x8xf32>
    %cst_120 = arith.constant dense<0.000000e+00> : vector<8xf32>
    %351 = vector.multi_reduction <add>, %350, %cst_120 [1] : vector<8x8xf32> to vector<8xf32>
    %352 = vector.shape_cast %351 : vector<8xf32> to vector<8x1xf32>
    %353 = tpu.reciprocal %352 {approx = true} : vector<8x1xf32> -> vector<8x1xf32>
    %354 = vector.broadcast %353 : vector<8x1xf32> to vector<8x8xf32>
    %355 = arith.mulf %350, %354 : vector<8x8xf32>
    %356 = arith.truncf %355 : vector<8x8xf32> to vector<8x8xbf16>
    %cst_121 = arith.constant dense<0.000000e+00> : vector<8x16xf32>
    %357 = tpu.matmul %356, %342, %cst_121 {dimension_numbers = #tpu.dot_dimension_numbers<[1], [0], [0], [1], [0, 0, 1, 1], [], []>} : vector<8x8xbf16>, vector<8x16xbf16>, vector<8x16xf32> -> vector<8x16xf32>
    %358 = arith.truncf %357 : vector<8x16xf32> to vector<8x16xbf16>
    %359 = vector.extract_strided_slice %244 {offsets = [1, 0, 0], sizes = [1, 16, 32], strides = [1, 1, 1]} : vector<2x16x32xbf16> to vector<1x16x32xbf16>
    %360 = vector.shape_cast %359 : vector<1x16x32xbf16> to vector<16x32xbf16>
    %cst_122 = arith.constant dense<0.000000e+00> : vector<8x32xf32>
    %361 = tpu.matmul %358, %360, %cst_122 {dimension_numbers = #tpu.dot_dimension_numbers<[1], [0], [0], [1], [0, 0, 1, 1], [], []>} : vector<8x16xbf16>, vector<16x32xbf16>, vector<8x32xf32> -> vector<8x32xf32>
    %362 = arith.addf %336, %361 : vector<8x32xf32>
    %363 = tpu.concatenate %306, %362 in 0 : vector<8x32xf32>, vector<8x32xf32> -> vector<16x32xf32>
    %c1_123 = arith.constant 1 : index
    %c0_124 = arith.constant 0 : index
    %c0_125 = arith.constant 0 : index
    %364 = vector.load %arg8[%c1_123, %c0_124, %c0_125] : memref<2x1x32xf32, #tpu.memory_space<vmem>>, vector<1x1x32xf32>
    %365 = vector.shape_cast %364 : vector<1x1x32xf32> to vector<1x32xf32>
    %366 = vector.broadcast %365 : vector<1x32xf32> to vector<16x32xf32>
    %367 = arith.addf %363, %366 : vector<16x32xf32>
    %368 = arith.addf %240, %367 : vector<16x32xf32>
    %c1_126 = arith.constant 1 : index
    %c0_127 = arith.constant 0 : index
    %c0_128 = arith.constant 0 : index
    %369 = vector.load %arg9[%c1_126, %c0_127, %c0_128] : memref<2x1x32xf32, #tpu.memory_space<vmem>>, vector<1x1x32xf32>
    %370 = vector.shape_cast %369 : vector<1x1x32xf32> to vector<1x32xf32>
    %c1_129 = arith.constant 1 : index
    %c0_130 = arith.constant 0 : index
    %c0_131 = arith.constant 0 : index
    %371 = vector.load %arg10[%c1_129, %c0_130, %c0_131] : memref<2x1x32xf32, #tpu.memory_space<vmem>>, vector<1x1x32xf32>
    %372 = vector.shape_cast %371 : vector<1x1x32xf32> to vector<1x32xf32>
    %cst_132 = arith.constant dense<0.000000e+00> : vector<16xf32>
    %373 = vector.multi_reduction <add>, %368, %cst_132 [1] : vector<16x32xf32> to vector<16xf32>
    %374 = vector.shape_cast %373 : vector<16xf32> to vector<16x1xf32>
    %cst_133 = arith.constant 3.200000e+01 : f32
    %375 = vector.broadcast %cst_133 : f32 to vector<16x1xf32>
    %376 = arith.divf %374, %375 : vector<16x1xf32>
    %377 = vector.broadcast %376 : vector<16x1xf32> to vector<16x32xf32>
    %378 = arith.subf %368, %377 : vector<16x32xf32>
    %379 = arith.mulf %378, %378 : vector<16x32xf32>
    %cst_134 = arith.constant dense<0.000000e+00> : vector<16xf32>
    %380 = vector.multi_reduction <add>, %379, %cst_134 [1] : vector<16x32xf32> to vector<16xf32>
    %381 = vector.shape_cast %380 : vector<16xf32> to vector<16x1xf32>
    %cst_135 = arith.constant 3.200000e+01 : f32
    %382 = vector.broadcast %cst_135 : f32 to vector<16x1xf32>
    %383 = arith.divf %381, %382 : vector<16x1xf32>
    %384 = vector.broadcast %376 : vector<16x1xf32> to vector<16x32xf32>
    %385 = arith.subf %368, %384 : vector<16x32xf32>
    %cst_136 = arith.constant 9.99999996E-13 : f32
    %386 = vector.broadcast %cst_136 : f32 to vector<16x1xf32>
    %387 = arith.addf %383, %386 : vector<16x1xf32>
    %388 = math.rsqrt %387 : vector<16x1xf32>
    %389 = vector.broadcast %388 : vector<16x1xf32> to vector<16x32xf32>
    %390 = arith.mulf %385, %389 : vector<16x32xf32>
    %391 = vector.broadcast %370 : vector<1x32xf32> to vector<16x32xf32>
    %392 = arith.mulf %390, %391 : vector<16x32xf32>
    %393 = vector.broadcast %372 : vector<1x32xf32> to vector<16x32xf32>
    %394 = arith.addf %392, %393 : vector<16x32xf32>
    %395 = arith.truncf %394 : vector<16x32xf32> to vector<16x32xbf16>
    %c1_137 = arith.constant 1 : index
    %c0_138 = arith.constant 0 : index
    %c0_139 = arith.constant 0 : index
    %396 = vector.load %arg11[%c1_137, %c0_138, %c0_139] : memref<2x32x64xbf16, #tpu.memory_space<vmem>>, vector<1x32x64xbf16>
    %397 = vector.shape_cast %396 : vector<1x32x64xbf16> to vector<32x64xbf16>
    %cst_140 = arith.constant dense<0.000000e+00> : vector<16x64xf32>
    %398 = tpu.matmul %395, %397, %cst_140 {dimension_numbers = #tpu.dot_dimension_numbers<[1], [0], [0], [1], [0, 0, 1, 1], [], []>} : vector<16x32xbf16>, vector<32x64xbf16>, vector<16x64xf32> -> vector<16x64xf32>
    %c1_141 = arith.constant 1 : index
    %c0_142 = arith.constant 0 : index
    %c0_143 = arith.constant 0 : index
    %399 = vector.load %arg12[%c1_141, %c0_142, %c0_143] : memref<2x1x64xf32, #tpu.memory_space<vmem>>, vector<1x1x64xf32>
    %400 = vector.shape_cast %399 : vector<1x1x64xf32> to vector<1x64xf32>
    %401 = vector.broadcast %400 : vector<1x64xf32> to vector<16x64xf32>
    %402 = arith.addf %398, %401 : vector<16x64xf32>
    %cst_144 = arith.constant 5.000000e-01 : f32
    %403 = vector.broadcast %cst_144 : f32 to vector<16x64xf32>
    %404 = arith.mulf %403, %402 : vector<16x64xf32>
    %cst_145 = arith.constant 4.471500e-02 : f32
    %405 = vector.broadcast %cst_145 : f32 to vector<16x64xf32>
    %406 = arith.mulf %405, %402 : vector<16x64xf32>
    %407 = arith.mulf %406, %402 : vector<16x64xf32>
    %408 = arith.mulf %407, %402 : vector<16x64xf32>
    %409 = arith.addf %402, %408 : vector<16x64xf32>
    %cst_146 = arith.constant 0.797884583 : f32
    %410 = vector.broadcast %cst_146 : f32 to vector<16x64xf32>
    %411 = arith.mulf %410, %409 : vector<16x64xf32>
    %412 = math.tanh %411 : vector<16x64xf32>
    %cst_147 = arith.constant 1.000000e+00 : f32
    %413 = vector.broadcast %cst_147 : f32 to vector<16x64xf32>
    %414 = arith.addf %413, %412 : vector<16x64xf32>
    %415 = arith.mulf %404, %414 : vector<16x64xf32>
    %416 = arith.truncf %415 : vector<16x64xf32> to vector<16x64xbf16>
    %c1_148 = arith.constant 1 : index
    %c0_149 = arith.constant 0 : index
    %c0_150 = arith.constant 0 : index
    %417 = vector.load %arg13[%c1_148, %c0_149, %c0_150] : memref<2x64x32xbf16, #tpu.memory_space<vmem>>, vector<1x64x32xbf16>
    %418 = vector.shape_cast %417 : vector<1x64x32xbf16> to vector<64x32xbf16>
    %cst_151 = arith.constant dense<0.000000e+00> : vector<16x32xf32>
    %419 = tpu.matmul %416, %418, %cst_151 {dimension_numbers = #tpu.dot_dimension_numbers<[1], [0], [0], [1], [0, 0, 1, 1], [], []>} : vector<16x64xbf16>, vector<64x32xbf16>, vector<16x32xf32> -> vector<16x32xf32>
    %c1_152 = arith.constant 1 : index
    %c0_153 = arith.constant 0 : index
    %c0_154 = arith.constant 0 : index
    %420 = vector.load %arg14[%c1_152, %c0_153, %c0_154] : memref<2x1x32xf32, #tpu.memory_space<vmem>>, vector<1x1x32xf32>
    %421 = vector.shape_cast %420 : vector<1x1x32xf32> to vector<1x32xf32>
    %422 = vector.broadcast %421 : vector<1x32xf32> to vector<16x32xf32>
    %423 = arith.addf %419, %422 : vector<16x32xf32>
    %424 = arith.addf %394, %423 : vector<16x32xf32>
    %c1_155 = arith.constant 1 : index
    %c0_156 = arith.constant 0 : index
    %c0_157 = arith.constant 0 : index
    %425 = vector.load %arg15[%c1_155, %c0_156, %c0_157] : memref<2x1x32xf32, #tpu.memory_space<vmem>>, vector<1x1x32xf32>
    %426 = vector.shape_cast %425 : vector<1x1x32xf32> to vector<1x32xf32>
    %c1_158 = arith.constant 1 : index
    %c0_159 = arith.constant 0 : index
    %c0_160 = arith.constant 0 : index
    %427 = vector.load %arg16[%c1_158, %c0_159, %c0_160] : memref<2x1x32xf32, #tpu.memory_space<vmem>>, vector<1x1x32xf32>
    %428 = vector.shape_cast %427 : vector<1x1x32xf32> to vector<1x32xf32>
    %cst_161 = arith.constant dense<0.000000e+00> : vector<16xf32>
    %429 = vector.multi_reduction <add>, %424, %cst_161 [1] : vector<16x32xf32> to vector<16xf32>
    %430 = vector.shape_cast %429 : vector<16xf32> to vector<16x1xf32>
    %cst_162 = arith.constant 3.200000e+01 : f32
    %431 = vector.broadcast %cst_162 : f32 to vector<16x1xf32>
    %432 = arith.divf %430, %431 : vector<16x1xf32>
    %433 = vector.broadcast %432 : vector<16x1xf32> to vector<16x32xf32>
    %434 = arith.subf %424, %433 : vector<16x32xf32>
    %435 = arith.mulf %434, %434 : vector<16x32xf32>
    %cst_163 = arith.constant dense<0.000000e+00> : vector<16xf32>
    %436 = vector.multi_reduction <add>, %435, %cst_163 [1] : vector<16x32xf32> to vector<16xf32>
    %437 = vector.shape_cast %436 : vector<16xf32> to vector<16x1xf32>
    %cst_164 = arith.constant 3.200000e+01 : f32
    %438 = vector.broadcast %cst_164 : f32 to vector<16x1xf32>
    %439 = arith.divf %437, %438 : vector<16x1xf32>
    %440 = vector.broadcast %432 : vector<16x1xf32> to vector<16x32xf32>
    %441 = arith.subf %424, %440 : vector<16x32xf32>
    %cst_165 = arith.constant 9.99999996E-13 : f32
    %442 = vector.broadcast %cst_165 : f32 to vector<16x1xf32>
    %443 = arith.addf %439, %442 : vector<16x1xf32>
    %444 = math.rsqrt %443 : vector<16x1xf32>
    %445 = vector.broadcast %444 : vector<16x1xf32> to vector<16x32xf32>
    %446 = arith.mulf %441, %445 : vector<16x32xf32>
    %447 = vector.broadcast %426 : vector<1x32xf32> to vector<16x32xf32>
    %448 = arith.mulf %446, %447 : vector<16x32xf32>
    %449 = vector.broadcast %428 : vector<1x32xf32> to vector<16x32xf32>
    %450 = arith.addf %448, %449 : vector<16x32xf32>
    %451 = arith.truncf %450 : vector<16x32xf32> to vector<16x32xbf16>
    %c0_166 = arith.constant 0 : index
    %c0_167 = arith.constant 0 : index
    %452 = vector.load %arg17[%c0_166, %c0_167] : memref<32x128xbf16, #tpu.memory_space<vmem>>, vector<32x128xbf16>
    %cst_168 = arith.constant dense<0.000000e+00> : vector<16x128xf32>
    %453 = tpu.matmul %451, %452, %cst_168 {dimension_numbers = #tpu.dot_dimension_numbers<[1], [0], [0], [1], [0, 0, 1, 1], [], []>} : vector<16x32xbf16>, vector<32x128xbf16>, vector<16x128xf32> -> vector<16x128xf32>
    %c0_169 = arith.constant 0 : index
    %c0_170 = arith.constant 0 : index
    %454 = vector.load %arg18[%c0_169, %c0_170] : memref<1x128xf32, #tpu.memory_space<vmem>>, vector<1x128xf32>
    %455 = vector.broadcast %454 : vector<1x128xf32> to vector<16x128xf32>
    %456 = arith.addf %453, %455 : vector<16x128xf32>
    %457 = vector.shape_cast %456 : vector<16x128xf32> to vector<2x8x128xf32>
    %c0_171 = arith.constant 0 : index
    %c0_172 = arith.constant 0 : index
    %c0_173 = arith.constant 0 : index
    %458 = vector.load %arg19[%c0_171, %c0_172, %c0_173] : memref<2x8x128xf32, #tpu.memory_space<vmem>>, vector<2x8x128xf32>
    tpu.vector_store %arg19[%c0_171, %c0_172, %c0_173], %457 {strides = array<i32>} : memref<2x8x128xf32, #tpu.memory_space<vmem>>, vector<2x8x128xf32>,
    %c0_174 = arith.constant 0 : index
    %c0_175 = arith.constant 0 : index
    %c0_176 = arith.constant 0 : index
    %459 = vector.load %arg2[%c0_174, %c0_175, %c0_176] : memref<2x8x1xi32, #tpu.memory_space<vmem>>, vector<2x8x1xi32>
    %460 = vector.shape_cast %459 : vector<2x8x1xi32> to vector<16x1xi32>
    %cst_177 = arith.constant dense<0xFF800000> : vector<16xf32>
    %461 = vector.multi_reduction <maximumf>, %456, %cst_177 [1] : vector<16x128xf32> to vector<16xf32>
    %462 = vector.shape_cast %461 : vector<16xf32> to vector<16x1xf32>
    %463 = vector.broadcast %462 : vector<16x1xf32> to vector<16x128xf32>
    %464 = arith.subf %456, %463 : vector<16x128xf32>
    %465 = math.exp %464 : vector<16x128xf32>
    %cst_178 = arith.constant dense<0.000000e+00> : vector<16xf32>
    %466 = vector.multi_reduction <add>, %465, %cst_178 [1] : vector<16x128xf32> to vector<16xf32>
    %467 = vector.shape_cast %466 : vector<16xf32> to vector<16x1xf32>
    %468 = math.log %467 : vector<16x1xf32>
    %469 = vector.broadcast %468 : vector<16x1xf32> to vector<16x128xf32>
    %470 = arith.subf %464, %469 : vector<16x128xf32>
    %471 = tpu.iota {dimensions = array<i32: 1>} : vector<16x128xi32>
    %472 = vector.broadcast %460 : vector<16x1xi32> to vector<16x128xi32>
    %473 = arith.cmpi eq, %471, %472 : vector<16x128xi32>
    %cst_179 = arith.constant 0.000000e+00 : f32
    %474 = vector.broadcast %cst_179 : f32 to vector<16x128xf32>
    %475 = arith.select %473, %470, %474 : vector<16x128xi1>, vector<16x128xf32>
    %cst_180 = arith.constant dense<0.000000e+00> : vector<16xf32>
    %476 = vector.multi_reduction <add>, %475, %cst_180 [1] : vector<16x128xf32> to vector<16xf32>
    %477 = vector.shape_cast %476 : vector<16xf32> to vector<16x1xf32>
    %cst_181 = arith.constant 0.000000e+00 : f32
    %478 = vector.broadcast %cst_181 : f32 to vector<16x1xf32>
    %479 = arith.subf %478, %477 : vector<16x1xf32>
    %c-100_i32 = arith.constant -100 : i32
    %480 = vector.broadcast %c-100_i32 : i32 to vector<16x1xi32>
    %481 = arith.cmpi ne, %460, %480 : vector<16x1xi32>
    %cst_182 = arith.constant 0.000000e+00 : f32
    %482 = vector.broadcast %cst_182 : f32 to vector<16x1xf32>
    %483 = arith.select %481, %479, %482 : vector<16x1xi1>, vector<16x1xf32>
    %484 = vector.shape_cast %483 : vector<16x1xf32> to vector<1x16x1xf32>
    %cst_183 = arith.constant dense<0.000000e+00> : vector<1xf32>
    %485 = vector.multi_reduction <add>, %484, %cst_183 [1, 2] : vector<1x16x1xf32> to vector<1xf32>
    %486 = vector.shape_cast %485 : vector<1xf32> to vector<1x1x1xf32>
    %487 = vector.extract %486[0, 0, 0] : f32 from vector<1x1x1xf32>
    %488 = arith.extui %481 : vector<16x1xi1> to vector<16x1xi32>
    %489 = arith.sitofp %488 : vector<16x1xi32> to vector<16x1xf32>
    %490 = vector.shape_cast %489 : vector<16x1xf32> to vector<1x16x1xf32>
    %cst_184 = arith.constant dense<0.000000e+00> : vector<1xf32>
    %491 = vector.multi_reduction <add>, %490, %cst_184 [1, 2] : vector<1x16x1xf32> to vector<1xf32>
    %492 = vector.shape_cast %491 : vector<1xf32> to vector<1x1x1xf32>
    %493 = vector.extract %492[0, 0, 0] : f32 from vector<1x1x1xf32>
    %494 = tpu.iota {dimensions = array<i32: 1>} : vector<1x128xi32>
    %c0_i32 = arith.constant 0 : i32
    %495 = vector.broadcast %c0_i32 : i32 to vector<1x128xi32>
    %496 = arith.cmpi eq, %494, %495 : vector<1x128xi32>
    %c1_i32 = arith.constant 1 : i32
    %497 = vector.broadcast %c1_i32 : i32 to vector<1x128xi32>
    %498 = arith.cmpi eq, %494, %497 : vector<1x128xi32>
    %cst_185 = arith.constant 0.000000e+00 : f32
    %499 = vector.broadcast %493 : f32 to vector<1x128xf32>
    %500 = vector.broadcast %cst_185 : f32 to vector<1x128xf32>
    %501 = arith.select %498, %499, %500 : vector<1x128xi1>, vector<1x128xf32>
    %502 = vector.broadcast %487 : f32 to vector<1x128xf32>
    %503 = arith.select %496, %502, %501 : vector<1x128xi1>, vector<1x128xf32>
    %c0_186 = arith.constant 0 : index
    %c0_187 = arith.constant 0 : index
    %504 = vector.load %arg20[%c0_186, %c0_187] : memref<1x128xf32, #tpu.memory_space<vmem>>, vector<1x128xf32>
    tpu.vector_store %arg20[%c0_186, %c0_187], %503 {strides = array<i32>} : memref<1x128xf32, #tpu.memory_space<vmem>>, vector<1x128xf32>,
    return
  }
}

</mosaic_0001>

<bundles_post_ra>
// kernel: tpu_custom_call.1
= control target key start
LH: loop header
LB: loop body
LE: loop exit
PB: predicated region body
PF: predicated region fallthrough
CT: control target
= control target key end

     0   :  { %s2671_s0 = inlined_call_operand.vmem [shape: f32[2,8,32], index: 0, kind: input, shape index: {}]   ;;  %s2672_s1 = inlined_call_operand.hbm [shape: f32[2,1,8], index: 1, kind: input, shape index: {}]   ;;  %s2673_s2 = inlined_call_operand.vmem [shape: s32[2,8,1], index: 2, kind: input, shape index: {}]   ;;  %s2674_s3 = inlined_call_operand.vmem [shape: f32[1,32], index: 3, kind: input, shape index: {}]   ;;  %s2675_s4 = inlined_call_operand.hbm [shape: f32[1,32], index: 4, kind: input, shape index: {}]   ;;  %s2676_s5 = inlined_call_operand.vmem [shape: bf16[2,32,96], index: 5, kind: input, shape index: {}]   ;;  %s2677_s6 = inlined_call_operand.hbm [shape: f32[2,1,96], index: 6, kind: input, shape index: {}]   ;;  %s2678_s7 = inlined_call_operand.vmem [shape: bf16[2,2,16,32], index: 7, kind: input, shape index: {}]   ;;  %s2679_s8 = inlined_call_operand.hbm [shape: f32[2,1,32], index: 8, kind: input, shape index: {}]   ;;  %s2680_s9 = inlined_call_operand.hbm [shape: f32[2,1,32], index: 9, kind: input, shape index: {}]   ;;  %s2681_s10 = inlined_call_operand.hbm [shape: f32[2,1,32], index: 10, kind: input, shape index: {}]   ;;  %s2682_s11 = inlined_call_operand.vmem [shape: bf16[2,32,64], index: 11, kind: input, shape index: {}]   ;;  %s2683_s12 = inlined_call_operand.hbm [shape: f32[2,1,64], index: 12, kind: input, shape index: {}]   ;;  %s2684_s13 = inlined_call_operand.vmem [shape: bf16[2,64,32], index: 13, kind: input, shape index: {}]   ;;  %s2685_s14 = inlined_call_operand.hbm [shape: f32[2,1,32], index: 14, kind: input, shape index: {}]   ;;  %s2686_s15 = inlined_call_operand.hbm [shape: f32[2,1,32], index: 15, kind: input, shape index: {}]   ;;  %s2687_s16 = inlined_call_operand.hbm [shape: f32[2,1,32], index: 16, kind: input, shape index: {}]   ;;  %s2688_s17 = inlined_call_operand.vmem [shape: bf16[32,128], index: 17, kind: input, shape index: {}]   ;;  %s2689_s18 = inlined_call_operand.vmem [shape: f32[1,128], index: 18, kind: input, shape index: {}]   ;;  %s2690_s19 = inlined_call_operand.hbm [shape: f32[2,8,128], index: 19, kind: output, shape index: {0}]   ;;  %s2691_s20 = inlined_call_operand.hbm [shape: f32[1,128], index: 20, kind: output, shape index: {1}]  }
   0x1   :  { %2694 = sst [smem:[#allocation30_spill]] %s2671_s0 }
   0x2   :  { %2695 = sst [smem:[#allocation31_spill]] %s2672_s1 }
   0x3   :  { %2696 = sst [smem:[#allocation32_spill]] %s2673_s2 }
   0x4   :  { %2697 = sst [smem:[#allocation33_spill]] %s2674_s3 }
   0x5   :  { %2698 = sst [smem:[#allocation34_spill]] %s2675_s4 }
   0x6   :  { %26 = vsyncpa [#allocation3], 0 }
   0x7   :  { %27 = vsyncpa [#allocation6], 0 }
   0x8   :  { %28 = vsyncpa [#allocation9], 0 }
   0x9   :  { %29 = vsyncpa [#allocation12], 0 }
   0xa   :  { %30 = vsyncpa [#allocation15], 0 }
   0xb   :  { %31 = vsyncpa [#allocation18], 0 }
   0xc   :  { %32 = vsyncpa [#allocation4], 0  ;;  %s2699_s23 = sld [smem:[#allocation34_spill]] }
  0x12   :  { %s58_s24 = sshll.u32 %s2699_s23, 4  ;;  %s59_s24 = int_to_ptr.hbm [resolvable:$true] %s58_s24 }
  0x13   :  { %33 = vsyncpa [#allocation21], 0  ;;  %s2220_s2 = smov [#allocation5]   ;;  %s85_s27 = sshll.u32 %s2679_s8, 4  ;;  %s86_s27 = int_to_ptr.hbm [resolvable:$true] %s85_s27 }
  0x14   :  { %s60_s25 = sshll.u32 %s2220_s2, 4  ;;  %s2221_s28 = smov [#allocation8]   ;;  %s61_s25 = int_to_ptr.vmem [resolvable:$true] %s60_s25 }
  0x15   :  { %63 = dma.hbm_to_vmem [thread:$0]  %s59_s24, 16, %s61_s25, [#allocation6]  }
  0x16   :  { %s87_s4 = sshll.u32 %s2221_s28, 4  ;;  %s111_s0 = sshll.u32 %s2681_s10, 4  ;;  %s88_s4 = int_to_ptr.vmem [resolvable:$true] %s87_s4  ;;  %s112_s0 = int_to_ptr.hbm [resolvable:$true] %s111_s0 }
  0x17   :  { %s2222_s21 = smov 16   ;;  %s2223_s1 = smov 1  }
  0x18   :  { %93 = dma.hbm_to_vmem [thread:$0]  %s86_s27, 32, %s88_s4, [#allocation9], %s2222_s21, %s2222_s21, %s2223_s1  }
  0x19   :  { %s141_s24 = sshll.u32 %s2685_s14, 4  ;;  %s2224_s8 = smov [#allocation11]   ;;  %s142_s24 = int_to_ptr.hbm [resolvable:$true] %s141_s24 }
  0x1a   :  { %s113_s2 = sshll.u32 %s2224_s8, 4  ;;  %s2225_s10 = smov [#allocation14]   ;;  %s114_s2 = int_to_ptr.vmem [resolvable:$true] %s113_s2 }
  0x1b   :  { %119 = dma.hbm_to_vmem [thread:$0]  %s112_s0, 32, %s114_s2, [#allocation12], %s2222_s21, %s2222_s21, %s2223_s1  }
  0x1c   :  { %s143_s25 = sshll.u32 %s2225_s10, 4  ;;  %s2700_s28 = sld [smem:[#allocation31_spill]]  ;;  %s144_s25 = int_to_ptr.vmem [resolvable:$true] %s143_s25 }
  0x1d   :  { %149 = dma.hbm_to_vmem [thread:$0]  %s142_s24, 32, %s144_s25, [#allocation15], %s2222_s21, %s2222_s21, %s2223_s1  }
  0x1e   :  { %s70_s4 = sshll.u32 %s2677_s6, 4  ;;  %s2226_s30 = smov [#allocation2]   ;;  %s71_s4 = int_to_ptr.hbm [resolvable:$true] %s70_s4 }
  0x1f   :  { %s42_s22 = sshll.u32 %s2226_s30, 4  ;;  %s2227_s0 = smov [#allocation7]   ;;  %s43_s22 = int_to_ptr.vmem [resolvable:$true] %s42_s22 }
  0x20   :  { %s72_s23 = sshll.u32 %s2227_s0, 4  ;;  %s98_s10 = sshll.u32 %s2680_s9, 4  ;;  %s73_s23 = int_to_ptr.vmem [resolvable:$true] %s72_s23  ;;  %s99_s10 = int_to_ptr.hbm [resolvable:$true] %s98_s10 }
  0x21   :  { %78 = dma.hbm_to_vmem [thread:$0]  %s71_s4, 32, %s73_s23, [#allocation6], %s2222_s21, %s2222_s21, %s2223_s1  }
  0x22   :  { %s40_s29 = sshll.u32 %s2700_s28, 4  ;;  %s126_s25 = sshll.u32 %s2683_s12, 4  ;;  %s41_s29 = int_to_ptr.hbm [resolvable:$true] %s40_s29  ;;  %s127_s25 = int_to_ptr.hbm [resolvable:$true] %s126_s25 }
  0x23   :  { %48 = dma.hbm_to_vmem [thread:$0]  %s41_s29, 32, %s43_s22, [#allocation3], %s2222_s21, %s2222_s21, %s2223_s1  }
  0x24   :  { %s2228_s3 = smov [#allocation10]   ;;  %s2229_s28 = smov [#allocation13]  }
  0x25   :  { %s100_s26 = sshll.u32 %s2228_s3, 4  ;;  %s128_s9 = sshll.u32 %s2229_s28, 4  ;;  %s101_s26 = int_to_ptr.vmem [resolvable:$true] %s100_s26  ;;  %s129_s9 = int_to_ptr.vmem [resolvable:$true] %s128_s9 }
  0x26   :  { %106 = dma.hbm_to_vmem [thread:$0]  %s99_s10, 32, %s101_s26, [#allocation9], %s2222_s21, %s2222_s21, %s2223_s1  }
  0x27   :  { %s154_s27 = sshll.u32 %s2686_s15, 4  ;;  %s167_s30 = sshll.u32 %s2687_s16, 4  ;;  %s155_s27 = int_to_ptr.hbm [resolvable:$true] %s154_s27  ;;  %s168_s30 = int_to_ptr.hbm [resolvable:$true] %s167_s30 }
  0x28   :  { %134 = dma.hbm_to_vmem [thread:$0]  %s127_s25, 32, %s129_s9, [#allocation12], %s2222_s21, %s2222_s21, %s2223_s1  }
  0x29   :  { %s2230_s22 = smov [#allocation16]   ;;  %s2231_s23 = smov [#allocation17]  }
  0x2a   :  { %s156_s0 = sshll.u32 %s2230_s22, 4  ;;  %s169_s15 = sshll.u32 %s2231_s23, 4  ;;  %s157_s0 = int_to_ptr.vmem [resolvable:$true] %s156_s0  ;;  %s170_s15 = int_to_ptr.vmem [resolvable:$true] %s169_s15 }
  0x2b   :  { %162 = dma.hbm_to_vmem [thread:$0]  %s155_s27, 32, %s157_s0, [#allocation15], %s2222_s21, %s2222_s21, %s2223_s1  }
  0x2c   :  { %175 = dma.hbm_to_vmem [thread:$0]  %s168_s30, 32, %s170_s15, [#allocation18], %s2222_s21, %s2222_s21, %s2223_s1  }
  0x2d   :  { %2204 = dma.done.wait [#allocation3], 32  }
  0x2e   :  { %2205 = vsyncadd [#allocation3], 4294967264 }
  0x2f   :  { %2206 = dma.done.wait [#allocation6], 48  }
  0x30   :  { %2207 = vsyncadd [#allocation6], 4294967248 }
  0x31   :  { %2208 = dma.done.wait [#allocation9], 64  }
  0x32   :  { %2209 = vsyncadd [#allocation9], 4294967232 }
  0x33   :  { %2210 = dma.done.wait [#allocation12], 64  }
  0x34   :  { %2211 = vsyncadd [#allocation12], 4294967232 }
  0x35   :  { %2212 = dma.done.wait [#allocation15], 64  }
  0x36   :  { %2213 = vsyncadd [#allocation15], 4294967232 }
  0x37   :  { %2214 = dma.done.wait [#allocation18], 32  }
  0x38   :  { %2215 = vsyncadd [#allocation18], 4294967264  ;;  %vm225_vm0 = vcmask 261120   ;;  %s2701_s2 = sld [smem:[#allocation30_spill]]  ;;  %v2232_v4 = vmov 32.0   ;;  %v1775_v21 = vld [vmem:[%s2676_s5 + $0x8] sm:$0xff] }
  0x39   :  { %1846 = vrcp.f32 %v2232_v4  ;;  %327 = vmatpush.bf16.msra.mxu0 %v1775_v21  ;;  %v1774_v23 = vld [vmem:[%s2676_s5] sm:$0xff]  ;;  %s2702_s28 = sld [smem:[#allocation33_spill]]  ;;  %s2233_s9 = smov 112   ;;  %vm342_vm8 = vcmask 130048   ;;  %vm362_vm9 = vcmask 64512   ;;  %vm380_vm10 = vcmask 1043456  }
  0x3a   :  { %v1828_v47 = vld [vmem:[#allocation5] ss:$0 sm:$0xff]  ;;  %v1829_v52 = vld [vmem:[#allocation7] ss:$0 sm:$0xff]  ;;  %s2234_s29 = smov 96   ;;  %s2235_s14 = smov 80  }
  0x3b   :  { %v287_v61 = vld [vmem:[#allocation2] sm:$0x1]  ;;  %s2236_s27 = smov 64   ;;  %s2237_s12 = smov 48  }
  0x3c   :  { %v1631_v62 = vadd.f32 -1.0, %v287_v61  ;;  %s2703_s26 = sld [smem:[#allocation32_spill]]  ;;  %s2240_s4 = smov [#allocation19]  }
  0x3d   :  { %328 = vmatpush.bf16.msra.mxu0 %v1774_v23  ;;  %s1595_s30 = sshll.u32 %s2240_s4, 4  ;;  %s1611_s0 = sshll.u32 %s2691_s20, 4  ;;  %s1596_s30 = int_to_ptr.vmem [resolvable:$true] %s1595_s30  ;;  %s1612_s0 = int_to_ptr.hbm [resolvable:$true] %s1611_s0 }
  0x3e   :  { %v221_v0 = vld [vmem:[%s2701_s2] sm:$0xff]  ;;  %v222_v1 = vld [vmem:[%s2701_s2 + $0x8] sm:$0xff]  ;;  %v291_v63 = vmul.f32 1e+09, %v1631_v62 }
  0x3f   :  { %v226_v2 = vsel %vm225_vm0, %v221_v0, 0.0  ;;  %v229_v3 = vsel %vm225_vm0, %v222_v1, 0.0  ;;  %v1847_v5 = vpop.eup %1846  ;;  %v1827_v42 = vld [vmem:[%s2702_s28] ss:$0 sm:$0xff] }
  0x40   :  { %227 = vadd.xlane.f32.xlu0 %v226_v2  ;;  %v233_v6 = vmul.f32 32.0, %v1847_v5  ;;  %vm237_vm1 = vweird.f32 %v1847_v5 }
  0x42   :  { %v234_v7 = vsub.f32 1.0, %v233_v6 }
  0x44   :  { %v235_v8 = vmul.f32 %v1847_v5, %v234_v7 }
  0x46   :  { %v236_v9 = vadd.f32 %v1847_v5, %v235_v8 }
  0x48   :  { %230 = vadd.xlane.f32.xlu0 %v229_v3  ;;  %v2414_v10 = vsel %vm237_vm1, %v1847_v5, %v236_v9 }
  0xb3   :  { %v228_v11 = vpop.xlane.xlu0 %227 }
  0xb4   :  { %v239_v12 = vmul.f32 %v2414_v10, %v228_v11 }
  0xb6   :  { %v241_v13 = vsub.f32 %v221_v0, %v239_v12  ;;  %v2445_v0 = vperm.slane %v291_v63, 0 }
  0xb8   :  { %v243_v14 = vmul.f32 %v241_v13, %v241_v13 }
  0xba   :  { %v245_v15 = vsel %vm225_vm0, %v243_v14, 0.0 }
  0xbb   :  { %246 = vadd.xlane.f32.xlu1 %v245_v15  ;;  %v231_v16 = vpop.xlane.xlu0 %230 }
  0xbc   :  { %v240_v17 = vmul.f32 %v2414_v10, %v231_v16 }
  0xbe   :  { %v242_v18 = vsub.f32 %v222_v1, %v240_v17 }
  0xc0   :  { %v244_v19 = vmul.f32 %v242_v18, %v242_v18 }
  0xc2   :  { %v248_v20 = vsel %vm225_vm0, %v244_v19, 0.0 }
  0xc3   :  { %249 = vadd.xlane.f32.xlu1 %v248_v20 }
 0x12e   :  { %v247_v22 = vpop.xlane.xlu1 %246 }
 0x12f   :  { %v251_v24 = vmul.f32 %v247_v22, %v2414_v10 }
 0x131   :  { %v253_v25 = vadd.f32 1e-12, %v251_v24 }
 0x133   :  { %1848 = vrsqrt.f32 %v253_v25  ;;  %vm261_vm3 = vweird.f32 %v253_v25 }
 0x136   :  { %v250_v26 = vpop.xlane.xlu1 %249 }
 0x137   :  { %v252_v27 = vmul.f32 %v250_v26, %v2414_v10 }
 0x139   :  { %v1849_v28 = vpop.eup %1848  ;;  %v254_v29 = vadd.f32 1e-12, %v252_v27  ;;  %v1777_v27 = vld [vmem:[%s2678_s7 + $0x8] sm:$0xff] }
 0x13a   :  { %v256_v30 = vmul.f32 %v1849_v28, %v253_v25  ;;  %vm262_vm2 = vweird.f32 %v1849_v28  ;;  %471 = vmatpush.bf16.msrb.mxu0 %v1777_v27 }
 0x13b   :  { %1850 = vrsqrt.f32 %v254_v29  ;;  %vm263_vm4 = vmor %vm261_vm3, %vm262_vm2  ;;  %vm271_vm6 = vweird.f32 %v254_v29  ;;  %vm805_vm2 = vcmask 523264  }
 0x13c   :  { %v257_v31 = vmul.f32 %v1849_v28, %v256_v30 }
 0x13e   :  { %v258_v32 = vmul.f32 0.5, %v257_v31 }
 0x140   :  { %v259_v33 = vsub.f32 1.5, %v258_v32 }
 0x141   :  { %v1851_v34 = vpop.eup %1850 }
 0x142   :  { %v260_v35 = vmul.f32 %v1849_v28, %v259_v33  ;;  %v266_v36 = vmul.f32 %v1851_v34, %v254_v29  ;;  %vm272_vm5 = vweird.f32 %v1851_v34 }
 0x143   :  { %vm273_vm7 = vmor %vm271_vm6, %vm272_vm5 }
 0x144   :  { %v267_v37 = vmul.f32 %v1851_v34, %v266_v36  ;;  %v264_v38 = vsel %vm263_vm4, %v1849_v28, %v260_v35  ;;  %v288_v35 = vld [vmem:[#allocation2 + $0x1] sm:$0x1] }
 0x145   :  { %v275_v41 = vmul.f32 %v264_v38, %v241_v13  ;;  %v1632_v38 = vadd.f32 -1.0, %v288_v35 }
 0x146   :  { %v268_v39 = vmul.f32 0.5, %v267_v37 }
 0x147   :  { %v280_v46 = vmul.f32 %v1827_v42, %v275_v41 }
 0x148   :  { %v269_v40 = vsub.f32 1.5, %v268_v39 }
 0x149   :  { %v2431_v49 = vadd.f32 %v1828_v47, %v280_v46 }
 0x14a   :  { %v270_v43 = vmul.f32 %v1851_v34, %v269_v40 }
 0x14c   :  { %v274_v44 = vsel %vm273_vm7, %v1851_v34, %v270_v43 }
 0x14d   :  { %v276_v45 = vmul.f32 %v274_v44, %v242_v18 }
 0x14f   :  { %v281_v48 = vmul.f32 %v1827_v42, %v276_v45  ;;  %v292_v42 = vmul.f32 1e+09, %v1632_v38 }
 0x151   :  { %v2433_v50 = vadd.f32 %v1828_v47, %v281_v48  ;;  %v2474_v43 = vperm.slane %v292_v42, 0  ;;  %v1776_v48 = vld [vmem:[%s2678_s7] sm:$0xff] }
 0x153   :  { %v301_v51 = vpack.c.bf16 %v2433_v50, %v2431_v49 }
 0x155   :  { %1641 = vmatmul.msk.bf16.vlgmr.msra.gmra.mxu0 %vm225_vm0, %v301_v51 }
 0x1d2   :  { %v330_v53 = vpop.f32.mrf.mxu0 }
 0x1d3   :  { %v331_v54 = vadd.f32 %v1829_v52, %v330_v53 }
 0x1d5   :  { %v335_v55 = vpack.c.bf16 %v331_v54, %v331_v54 }
 0x1d7   :  { %398 = vrot.lane.b32.xlu0 %v335_v55, %s2233_s9  ;;  %340 = vrot.lane.b32.xlu2 %v335_v55, %s2234_s29 }
 0x1da   :  { %v332_v9 = vpop.f32.mrf.mxu0 }
 0x1db   :  { %v333_v11 = vadd.f32 %v1829_v52, %v332_v9 }
 0x1dd   :  { %v2452_v12 = vpack.c.bf16 %v333_v11, %v333_v11 }
 0x1df   :  { %400 = vrot.lane.b32.xlu2 %v335_v55, %s2235_s14 }
 0x231   :  { %v341_v56 = vpop.permute.xlu2 %340 }
 0x232   :  { %v347_v57 = vsel %vm342_vm8, %v341_v56, 0 }
 0x233   :  { %356 = vmatpush.bf16.xpose.msra.mxu1 %v347_v57 }
 0x239   :  { %v401_v58 = vpop.permute.xlu2 %400 }
 0x23a   :  { %1642 = vmatmul.msk.bf16.vlgmr.msra.gmra.mxu1 %vm342_vm8, %v335_v55  ;;  %v406_v59 = vsel %vm342_vm8, %v401_v58, 0 }
 0x23b   :  { %415 = vmatpush.bf16.xpose.msra.mxu3 %v406_v59  ;;  %493 = vmatpush.bf16.msrb.mxu1 %v1776_v48 }
 0x249   :  { %v399_v60 = vpop.permute.xlu0 %398 }
 0x24a   :  { %1644 = vmatmul.msk.bf16.vlgmr.msra.gmra.mxu3 %vm342_vm8, %v399_v60 }
 0x2b7   :  { %v358_v1 = vpop.f32.mrf.mxu1 }
 0x2b8   :  { %v359_v2 = vadd.f32 %v358_v1, %v2445_v0 }
 0x2ba   :  { %v363_v3 = vsel %vm362_vm9, %v359_v2, -inf }
 0x2bb   :  { %364 = vmax.xlane.f32.xlu1 %v363_v3 }
 0x2bf   :  { %v360_v4 = vpop.f32.mrf.mxu1 }
 0x2cd   :  { %v417_v5 = vpop.f32.mrf.mxu3 }
 0x2ce   :  { %v418_v6 = vadd.f32 %v417_v5, %v2445_v0 }
 0x2d0   :  { %v421_v7 = vsel %vm362_vm9, %v418_v6, -inf }
 0x2d1   :  { %422 = vmax.xlane.f32.xlu2 %v421_v7 }
 0x2d4   :  { %375 = vrot.lane.b32.xlu1 %v335_v55, %s2236_s27 }
 0x2d5   :  { %v419_v8 = vpop.f32.mrf.mxu3 }
 0x2e9   :  { %504 = vrot.lane.b32.xlu2 %v2452_v12, %s2234_s29 }
 0x32e   :  { %v365_v13 = vpop.xlane.xlu1 %364 }
 0x32f   :  { %v366_v14 = vsub.f32 %v359_v2, %v365_v13 }
 0x331   :  { %v367_v15 = vmul.f32 1.442695, %v366_v14 }
 0x333   :  { %1852 = vpow2.f32 %v367_v15 }
 0x339   :  { %v1853_v16 = vpop.eup %1852 }
 0x33a   :  { %v369_v17 = vsel %vm362_vm9, %v1853_v16, 0.0 }
 0x33b   :  { %370 = vadd.xlane.f32.xlu1 %v369_v17 }
 0x344   :  { %v423_v18 = vpop.xlane.xlu2 %422 }
 0x345   :  { %v424_v19 = vsub.f32 %v418_v6, %v423_v18 }
 0x346   :  { %v376_v20 = vpop.permute.xlu1 %375 }
 0x347   :  { %v425_v21 = vmul.f32 1.442695, %v424_v19  ;;  %v382_v22 = vsel %vm380_vm10, %v376_v20, 0 }
 0x348   :  { %391 = vmatpush.bf16.msra.mxu2 %v382_v22 }
 0x349   :  { %1854 = vpow2.f32 %v425_v21 }
 0x34c   :  { %v505_v23 = vpop.permute.xlu2 %504 }
 0x34d   :  { %v510_v24 = vsel %vm342_vm8, %v505_v23, 0 }
 0x34e   :  { %519 = vmatpush.bf16.xpose.msrb.mxu3 %v510_v24 }
 0x34f   :  { %v1855_v25 = vpop.eup %1854 }
 0x350   :  { %v427_v26 = vsel %vm362_vm9, %v1855_v25, 0.0 }
 0x351   :  { %428 = vadd.xlane.f32.xlu0 %v427_v26 }
 0x354   :  { %433 = vrot.lane.b32.xlu1 %v335_v55, %s2237_s12 }
 0x355   :  { %1656 = vmatmul.msk.bf16.vlgmr.msrb.gmra.mxu3 %vm342_vm8, %v2452_v12 }
 0x356   :  { %626 = vmatpush.bf16.msra.mxu3 %v1777_v27 }
 0x35c   :  { %561 = vrot.lane.b32.xlu1 %v2452_v12, %s2235_s14 }
 0x364   :  { %559 = vrot.lane.b32.xlu1 %v2452_v12, %s2233_s9 }
 0x3ae   :  { %v371_v28 = vpop.xlane.xlu1 %370 }
 0x3af   :  { %1856 = vrcp.f32 %v371_v28 }
 0x3b5   :  { %v1857_v29 = vpop.eup %1856 }
 0x3b6   :  { %v373_v30 = vmul.f32 %v1857_v29, %v1853_v16 }
 0x3b8   :  { %v374_v31 = vpack.c.bf16 %v373_v30, %v373_v30 }
 0x3ba   :  { %1643 = vmatmul.msk.bf16.vlgmr.msra.gmra.mxu2 %vm362_vm9, %v374_v31 }
 0x3c4   :  { %v429_v32 = vpop.xlane.xlu0 %428 }
 0x3c5   :  { %1858 = vrcp.f32 %v429_v32 }
 0x3c6   :  { %v434_v33 = vpop.permute.xlu1 %433 }
 0x3c7   :  { %v439_v34 = vsel %vm380_vm10, %v434_v33, 0 }
 0x3c8   :  { %448 = vmatpush.bf16.msrb.mxu2 %v439_v34 }
 0x3cb   :  { %v1859_v36 = vpop.eup %1858 }
 0x3cc   :  { %v431_v37 = vmul.f32 %v1859_v36, %v1855_v25  ;;  %v1830_v25 = vld [vmem:[#allocation8] ss:$0 sm:$0xff] }
 0x3ce   :  { %v562_v39 = vpop.permute.xlu1 %561  ;;  %v432_v40 = vpack.c.bf16 %v431_v37, %v431_v37 }
 0x3cf   :  { %v567_v41 = vsel %vm342_vm8, %v562_v39, 0 }
 0x3d0   :  { %1645 = vmatmul.msk.bf16.vlgmr.msrb.gmra.mxu2 %vm362_vm9, %v432_v40  ;;  %576 = vmatpush.bf16.xpose.msra.mxu0 %v567_v41 }
 0x3d6   :  { %v560_v1 = vpop.permute.xlu1 %559 }
 0x3d8   :  { %v521_v44 = vpop.f32.mrf.mxu3 }
 0x3d9   :  { %v522_v45 = vadd.f32 %v521_v44, %v2474_v43 }
 0x3db   :  { %v525_v46 = vsel %vm362_vm9, %v522_v45, -inf }
 0x3dc   :  { %526 = vmax.xlane.f32.xlu0 %v525_v46 }
 0x3e0   :  { %v523_v47 = vpop.f32.mrf.mxu3 }
 0x3f0   :  { %537 = vrot.lane.b32.xlu0 %v2452_v12, %s2236_s27 }
 0x43d   :  { %v393_v51 = vpop.f32.mrf.mxu2 }
 0x43e   :  { %v397_v52 = vpack.c.bf16 %v393_v51, %v393_v51 }
 0x440   :  { %1655 = vmatmul.msk.bf16.vlgmr.msrb.gmra.mxu1 %vm342_vm8, %v397_v52 }
 0x445   :  { %v395_v53 = vpop.f32.mrf.mxu2 }
 0x44f   :  { %v527_v54 = vpop.xlane.xlu0 %526 }
 0x450   :  { %v528_v55 = vsub.f32 %v522_v45, %v527_v54 }
 0x452   :  { %v529_v56 = vmul.f32 1.442695, %v528_v55 }
 0x453   :  { %v450_v57 = vpop.f32.mrf.mxu2 }
 0x454   :  { %1860 = vpow2.f32 %v529_v56  ;;  %v454_v58 = vpack.c.bf16 %v450_v57, %v450_v57 }
 0x456   :  { %1650 = vmatmul.msk.bf16.vlgmr.msrb.gmra.mxu0 %vm342_vm8, %v454_v58 }
 0x45a   :  { %v1861_v59 = vpop.eup %1860 }
 0x45b   :  { %v452_v60 = vpop.f32.mrf.mxu2  ;;  %v531_v61 = vsel %vm362_vm9, %v1861_v59, 0.0 }
 0x45c   :  { %532 = vadd.xlane.f32.xlu2 %v531_v61  ;;  %v1778_v61 = vld [vmem:[%s2682_s11] sm:$0xff] }
 0x462   :  { %v538_v62 = vpop.permute.xlu0 %537 }
 0x463   :  { %v543_v63 = vsel %vm380_vm10, %v538_v62, 0 }
 0x464   :  { %552 = vmatpush.bf16.msra.mxu2 %v543_v63 }
 0x466   :  { %1658 = vmatmul.msk.bf16.vlgmr.msra.gmra.mxu0 %vm342_vm8, %v560_v1 }
 0x468   :  { %642 = vmatpush.bf16.msrb.mxu2 %v1776_v48 }
 0x4bd   :  { %v495_v2 = vpop.f32.mrf.mxu1 }
 0x4c5   :  { %v497_v3 = vpop.f32.mrf.mxu1 }
 0x4cf   :  { %v533_v4 = vpop.xlane.xlu2 %532 }
 0x4d0   :  { %1862 = vrcp.f32 %v533_v4 }
 0x4d3   :  { %v473_v5 = vpop.f32.mrf.mxu0 }
 0x4d4   :  { %v496_v6 = vadd.f32 %v495_v2, %v473_v5 }
 0x4d6   :  { %v1863_v7 = vpop.eup %1862  ;;  %v652_v26 = vadd.f32 %v1830_v25, %v496_v6 }
 0x4d7   :  { %v535_v8 = vmul.f32 %v1863_v7, %v1861_v59 }
 0x4d8   :  { %v654_v27 = vadd.f32 %v652_v26, %v2431_v49  ;;  %v1783_v26 = vld [vmem:[%s2684_s13 + $0x18] sm:$0xff] }
 0x4d9   :  { %v536_v9 = vpack.c.bf16 %v535_v8, %v535_v8 }
 0x4da   :  { %v658_v28 = vsel %vm225_vm0, %v654_v27, 0.0 }
 0x4db   :  { %v475_v11 = vpop.f32.mrf.mxu0  ;;  %1657 = vmatmul.msk.bf16.vlgmr.msra.gmra.mxu2 %vm362_vm9, %v536_v9 }
 0x4e3   :  { %v578_v13 = vpop.f32.mrf.mxu0 }
 0x4e4   :  { %v579_v14 = vadd.f32 %v578_v13, %v2474_v43 }
 0x4e6   :  { %v582_v15 = vsel %vm362_vm9, %v579_v14, -inf }
 0x4e7   :  { %583 = vmax.xlane.f32.xlu1 %v582_v15  ;;  %v1831_v15 = vld [vmem:[#allocation10] ss:$0 sm:$0xff] }
 0x4eb   :  { %v580_v16 = vpop.f32.mrf.mxu0 }
 0x55a   :  { %v584_v17 = vpop.xlane.xlu1 %583 }
 0x55b   :  { %v585_v18 = vsub.f32 %v579_v14, %v584_v17 }
 0x55d   :  { %v586_v19 = vmul.f32 1.442695, %v585_v18 }
 0x55e   :  { %v554_v20 = vpop.f32.mrf.mxu2 }
 0x55f   :  { %1864 = vpow2.f32 %v586_v19  ;;  %v558_v21 = vpack.c.bf16 %v554_v20, %v554_v20  ;;  %v1832_v19 = vld [vmem:[#allocation11] ss:$0 sm:$0xff] }
 0x561   :  { %1661 = vmatmul.msk.bf16.vlgmr.msrb.gmra.mxu2 %vm342_vm8, %v558_v21 }
 0x565   :  { %v1865_v22 = vpop.eup %1864 }
 0x566   :  { %v556_v23 = vpop.f32.mrf.mxu2  ;;  %v588_v24 = vsel %vm362_vm9, %v1865_v22, 0.0 }
 0x567   :  { %589 = vadd.xlane.f32.xlu0 %v588_v24 }
 0x57b   :  { %594 = vrot.lane.b32.xlu0 %v2452_v12, %s2237_s12 }
 0x5a5   :  { %659 = vadd.xlane.f32.xlu0 %v658_v28  ;;  %v1781_v28 = vld [vmem:[%s2684_s13 + $0x8] sm:$0xff] }
 0x5da   :  { %v590_v29 = vpop.xlane.xlu0 %589 }
 0x5db   :  { %1866 = vrcp.f32 %v590_v29  ;;  %v1780_v29 = vld [vmem:[%s2684_s13] sm:$0xff] }
 0x5e1   :  { %v1867_v31 = vpop.eup %1866 }
 0x5e2   :  { %v592_v32 = vmul.f32 %v1867_v31, %v1865_v22 }
 0x5e4   :  { %v644_v30 = vpop.f32.mrf.mxu2  ;;  %v593_v36 = vpack.c.bf16 %v592_v32, %v592_v32 }
 0x5ec   :  { %v646_v33 = vpop.f32.mrf.mxu2 }
 0x5ed   :  { %v595_v34 = vpop.permute.xlu0 %594 }
 0x5ee   :  { %v600_v35 = vsel %vm380_vm10, %v595_v34, 0 }
 0x5ef   :  { %609 = vmatpush.bf16.msra.mxu1 %v600_v35 }
 0x5f2   :  { %1659 = vmatmul.msk.bf16.vlgmr.msra.gmra.mxu1 %vm362_vm9, %v593_v36 }
 0x5f3   :  { %813 = vmatpush.bf16.msrb.mxu1 %v1783_v26 }
 0x618   :  { %v660_v12 = vpop.xlane.xlu0 %659 }
 0x619   :  { %v664_v37 = vmul.f32 %v660_v12, %v2414_v10 }
 0x61b   :  { %v666_v49 = vsub.f32 %v654_v27, %v664_v37  ;;  %v1782_v27 = vld [vmem:[%s2684_s13 + $0x10] sm:$0xff] }
 0x61c   :  { %814 = vmatpush.bf16.msrb.mxu1 %v1782_v27 }
 0x61d   :  { %v668_v38 = vmul.f32 %v666_v49, %v666_v49 }
 0x61f   :  { %v670_v39 = vsel %vm225_vm0, %v668_v38, 0.0 }
 0x620   :  { %671 = vadd.xlane.f32.xlu1 %v670_v39  ;;  %815 = vmatpush.bf16.msrb.mxu1 %v1781_v28 }
 0x624   :  { %816 = vmatpush.bf16.msrb.mxu1 %v1780_v29 }
 0x66f   :  { %v611_v40 = vpop.f32.mrf.mxu1 }
 0x670   :  { %v615_v41 = vpack.c.bf16 %v611_v40, %v611_v40 }
 0x672   :  { %1660 = vmatmul.msk.bf16.vlgmr.msra.gmra.mxu3 %vm342_vm8, %v615_v41 }
 0x677   :  { %v613_v42 = vpop.f32.mrf.mxu1 }
 0x693   :  { %v672_v57 = vpop.xlane.xlu1 %671 }
 0x694   :  { %v676_v58 = vmul.f32 %v672_v57, %v2414_v10 }
 0x696   :  { %v678_v59 = vadd.f32 1e-12, %v676_v58 }
 0x698   :  { %1868 = vrsqrt.f32 %v678_v59  ;;  %vm686_vm12 = vweird.f32 %v678_v59 }
 0x69e   :  { %v1869_v60 = vpop.eup %1868 }
 0x69f   :  { %v681_v62 = vmul.f32 %v1869_v60, %v678_v59  ;;  %vm687_vm11 = vweird.f32 %v1869_v60 }
 0x6a0   :  { %vm688_vm13 = vmor %vm686_vm12, %vm687_vm11 }
 0x6a1   :  { %v682_v63 = vmul.f32 %v1869_v60, %v681_v62 }
 0x6a3   :  { %v683_v4 = vmul.f32 0.5, %v682_v63 }
 0x6a5   :  { %v684_v5 = vsub.f32 1.5, %v683_v4 }
 0x6a7   :  { %v685_v7 = vmul.f32 %v1869_v60, %v684_v5 }
 0x6a9   :  { %v689_v11 = vsel %vm688_vm13, %v1869_v60, %v685_v7 }
 0x6aa   :  { %v700_v16 = vmul.f32 %v689_v11, %v666_v49  ;;  %v1785_v11 = vld [vmem:[%s2676_s5 + $0x18] sm:$0xff] }
 0x6ab   :  { %918 = vmatpush.bf16.msrb.mxu3 %v1785_v11 }
 0x6ac   :  { %v705_v20 = vmul.f32 %v1831_v15, %v700_v16 }
 0x6ae   :  { %v710_v23 = vadd.f32 %v1832_v19, %v705_v20 }
 0x6f5   :  { %v628_v44 = vpop.f32.mrf.mxu3 }
 0x6f6   :  { %v645_v45 = vadd.f32 %v644_v30, %v628_v44  ;;  %v1833_v30 = vld [vmem:[#allocation13] ss:$0 sm:$0xff] }
 0x6f8   :  { %v653_v46 = vadd.f32 %v1830_v25, %v645_v45 }
 0x6fa   :  { %v655_v47 = vadd.f32 %v653_v46, %v2433_v50  ;;  %v1779_v50 = vld [vmem:[%s2682_s11 + $0x8] sm:$0xff] }
 0x6fb   :  { %742 = vmatpush.bf16.msrb.mxu0 %v1779_v50 }
 0x6fc   :  { %v661_v48 = vsel %vm225_vm0, %v655_v47, 0.0 }
 0x6fd   :  { %662 = vadd.xlane.f32.xlu2 %v661_v48  ;;  %v630_v51 = vpop.f32.mrf.mxu3 }
 0x6ff   :  { %743 = vmatpush.bf16.msrb.mxu0 %v1778_v61 }
 0x770   :  { %v663_v52 = vpop.xlane.xlu2 %662 }
 0x771   :  { %v665_v53 = vmul.f32 %v663_v52, %v2414_v10 }
 0x773   :  { %v667_v54 = vsub.f32 %v655_v47, %v665_v53 }
 0x775   :  { %v669_v55 = vmul.f32 %v667_v54, %v667_v54 }
 0x777   :  { %v673_v56 = vsel %vm225_vm0, %v669_v55, 0.0  ;;  %v1834_v55 = vld [vmem:[#allocation14] ss:$0 sm:$0xff] }
 0x778   :  { %674 = vadd.xlane.f32.xlu2 %v673_v56 }
 0x7eb   :  { %v675_v1 = vpop.xlane.xlu2 %674 }
 0x7ec   :  { %v677_v2 = vmul.f32 %v675_v1, %v2414_v10 }
 0x7ee   :  { %v679_v3 = vadd.f32 1e-12, %v677_v2 }
 0x7f0   :  { %1870 = vrsqrt.f32 %v679_v3  ;;  %vm696_vm15 = vweird.f32 %v679_v3 }
 0x7f6   :  { %v1871_v6 = vpop.eup %1870 }
 0x7f7   :  { %v691_v8 = vmul.f32 %v1871_v6, %v679_v3  ;;  %vm697_vm14 = vweird.f32 %v1871_v6 }
 0x7f8   :  { %vm698_vm1 = vmor %vm696_vm15, %vm697_vm14 }
 0x7f9   :  { %v692_v9 = vmul.f32 %v1871_v6, %v691_v8 }
 0x7fb   :  { %v693_v13 = vmul.f32 0.5, %v692_v9 }
 0x7fd   :  { %v694_v14 = vsub.f32 1.5, %v693_v13 }
 0x7ff   :  { %v695_v17 = vmul.f32 %v1871_v6, %v694_v14 }
 0x801   :  { %v699_v18 = vsel %vm698_vm1, %v1871_v6, %v695_v17 }
 0x802   :  { %v701_v21 = vmul.f32 %v699_v18, %v667_v54 }
 0x804   :  { %v706_v22 = vmul.f32 %v1831_v15, %v701_v21  ;;  %v1784_v15 = vld [vmem:[%s2676_s5 + $0x10] sm:$0xff] }
 0x805   :  { %919 = vmatpush.bf16.msrb.mxu3 %v1784_v15 }
 0x806   :  { %v711_v24 = vadd.f32 %v1832_v19, %v706_v22 }
 0x808   :  { %v712_v25 = vpack.c.bf16 %v711_v24, %v710_v23 }
 0x80a   :  { %1670 = vmatmul.msk.bf16.vlgmr.msrb.gmra.mxu0 %vm225_vm0, %v712_v25 }
 0x887   :  { %v745_v31 = vpop.f32.mrf.mxu0 }
 0x888   :  { %v746_v32 = vadd.f32 %v1833_v30, %v745_v31 }
 0x88a   :  { %v752_v33 = vmul.f32 0.044715, %v746_v32  ;;  %v750_v47 = vmul.f32 0.5, %v746_v32 }
 0x88c   :  { %v754_v34 = vmul.f32 %v752_v33, %v746_v32 }
 0x88e   :  { %v756_v35 = vmul.f32 %v754_v34, %v746_v32 }
 0x88f   :  { %v747_v36 = vpop.f32.mrf.mxu0 }
 0x890   :  { %v758_v12 = vadd.f32 %v756_v35, %v746_v32  ;;  %v748_v37 = vadd.f32 %v1833_v30, %v747_v36  ;;  %v1835_v32 = vld [vmem:[#allocation16] ss:$0 sm:$0xff]  ;;  %v1836_v36 = vld [vmem:[#allocation17] ss:$0 sm:$0xff] }
 0x892   :  { %v753_v49 = vmul.f32 0.044715, %v748_v37  ;;  %v760_v38 = vmul.f32 0.7978846, %v758_v12  ;;  %v751_v48 = vmul.f32 0.5, %v748_v37 }
 0x894   :  { %v755_v39 = vmul.f32 %v753_v49, %v748_v37  ;;  %1872 = vtanh.f32 %v760_v38 }
 0x896   :  { %v757_v40 = vmul.f32 %v755_v39, %v748_v37 }
 0x898   :  { %v759_v41 = vadd.f32 %v757_v40, %v748_v37 }
 0x89a   :  { %v761_v42 = vmul.f32 0.7978846, %v759_v41  ;;  %v1873_v44 = vpop.eup %1872  ;;  %v1837_v41 = vld [vmem:[#allocation7 + $0x1] ss:$0 sm:$0xff] }
 0x89b   :  { %v764_v45 = vadd.f32 1.0, %v1873_v44 }
 0x89c   :  { %1874 = vtanh.f32 %v761_v42 }
 0x89d   :  { %v766_v52 = vmul.f32 %v764_v45, %v750_v47 }
 0x8a2   :  { %v1875_v46 = vpop.eup %1874 }
 0x8a3   :  { %v765_v51 = vadd.f32 1.0, %v1875_v46 }
 0x8a5   :  { %v767_v53 = vmul.f32 %v765_v51, %v751_v48 }
 0x8a7   :  { %v768_v54 = vpack.c.bf16 %v767_v53, %v766_v52  ;;  %v1787_v52 = vld [vmem:[%s2678_s7 + $0x18] sm:$0xff] }
 0x8a9   :  { %1687 = vmatmul.msk.bf16.vlgmr.msrb.gmra.mxu1 %vm805_vm2, %v768_v54 }
 0x926   :  { %v818_v56 = vpop.f32.mrf.mxu1 }
 0x927   :  { %v819_v57 = vadd.f32 %v1834_v55, %v818_v56 }
 0x929   :  { %v823_v58 = vadd.f32 %v819_v57, %v710_v23 }
 0x92b   :  { %v827_v59 = vsel %vm225_vm0, %v823_v58, 0.0 }
 0x92c   :  { %828 = vadd.xlane.f32.xlu1 %v827_v59 }
 0x92e   :  { %v820_v50 = vpop.f32.mrf.mxu1 }
 0x92f   :  { %v821_v60 = vadd.f32 %v1834_v55, %v820_v50 }
 0x931   :  { %v824_v61 = vadd.f32 %v821_v60, %v711_v24 }
 0x933   :  { %v830_v62 = vsel %vm225_vm0, %v824_v61, 0.0 }
 0x934   :  { %831 = vadd.xlane.f32.xlu2 %v830_v62 }
 0x99f   :  { %v829_v63 = vpop.xlane.xlu1 %828 }
 0x9a0   :  { %v833_v1 = vmul.f32 %v829_v63, %v2414_v10 }
 0x9a2   :  { %v835_v2 = vsub.f32 %v823_v58, %v833_v1 }
 0x9a4   :  { %v837_v3 = vmul.f32 %v835_v2, %v835_v2 }
 0x9a6   :  { %v839_v4 = vsel %vm225_vm0, %v837_v3, 0.0 }
 0x9a7   :  { %v832_v5 = vpop.xlane.xlu2 %831  ;;  %840 = vadd.xlane.f32.xlu1 %v839_v4 }
 0x9a8   :  { %v834_v6 = vmul.f32 %v832_v5, %v2414_v10 }
 0x9aa   :  { %v836_v7 = vsub.f32 %v824_v61, %v834_v6 }
 0x9ac   :  { %v838_v8 = vmul.f32 %v836_v7, %v836_v7 }
 0x9ae   :  { %v842_v9 = vsel %vm225_vm0, %v838_v8, 0.0 }
 0x9af   :  { %843 = vadd.xlane.f32.xlu2 %v842_v9 }
 0xa1a   :  { %v841_v13 = vpop.xlane.xlu1 %840 }
 0xa1b   :  { %v845_v14 = vmul.f32 %v841_v13, %v2414_v10 }
 0xa1d   :  { %v847_v16 = vadd.f32 1e-12, %v845_v14 }
 0xa1f   :  { %1876 = vrsqrt.f32 %v847_v16  ;;  %vm855_vm4 = vweird.f32 %v847_v16 }
 0xa22   :  { %v844_v17 = vpop.xlane.xlu2 %843 }
 0xa23   :  { %v846_v18 = vmul.f32 %v844_v17, %v2414_v10 }
 0xa25   :  { %v1877_v19 = vpop.eup %1876  ;;  %v848_v20 = vadd.f32 1e-12, %v846_v18 }
 0xa26   :  { %v850_v21 = vmul.f32 %v1877_v19, %v847_v16  ;;  %vm856_vm3 = vweird.f32 %v1877_v19 }
 0xa27   :  { %1878 = vrsqrt.f32 %v848_v20  ;;  %vm857_vm5 = vmor %vm855_vm4, %vm856_vm3  ;;  %vm865_vm7 = vweird.f32 %v848_v20 }
 0xa28   :  { %v851_v22 = vmul.f32 %v1877_v19, %v850_v21 }
 0xa2a   :  { %v852_v23 = vmul.f32 0.5, %v851_v22 }
 0xa2c   :  { %v853_v24 = vsub.f32 1.5, %v852_v23 }
 0xa2d   :  { %v1879_v25 = vpop.eup %1878 }
 0xa2e   :  { %v854_v26 = vmul.f32 %v1877_v19, %v853_v24  ;;  %v860_v27 = vmul.f32 %v1879_v25, %v848_v20  ;;  %vm866_vm6 = vweird.f32 %v1879_v25 }
 0xa2f   :  { %vm867_vm11 = vmor %vm865_vm7, %vm866_vm6 }
 0xa30   :  { %v861_v28 = vmul.f32 %v1879_v25, %v860_v27  ;;  %v858_v29 = vsel %vm857_vm5, %v1877_v19, %v854_v26 }
 0xa31   :  { %v869_v33 = vmul.f32 %v858_v29, %v835_v2  ;;  %v1786_v29 = vld [vmem:[%s2678_s7 + $0x10] sm:$0xff]  ;;  %s2242_s7 = smov 8  }
 0xa32   :  { %v862_v30 = vmul.f32 0.5, %v861_v28 }
 0xa33   :  { %v874_v12 = vmul.f32 %v1835_v32, %v869_v33 }
 0xa34   :  { %v863_v31 = vsub.f32 1.5, %v862_v30 }
 0xa35   :  { %v2542_v38 = vadd.f32 %v1836_v36, %v874_v12 }
 0xa36   :  { %v864_v34 = vmul.f32 %v1879_v25, %v863_v31 }
 0xa38   :  { %v868_v35 = vsel %vm867_vm11, %v1879_v25, %v864_v34 }
 0xa39   :  { %v870_v37 = vmul.f32 %v868_v35, %v836_v7 }
 0xa3b   :  { %v875_v49 = vmul.f32 %v1835_v32, %v870_v37 }
 0xa3d   :  { %v2544_v39 = vadd.f32 %v1836_v36, %v875_v49 }
 0xa3f   :  { %v891_v40 = vpack.c.bf16 %v2544_v39, %v2542_v38 }
 0xa41   :  { %1704 = vmatmul.msk.bf16.vlgmr.msrb.gmra.mxu3 %vm225_vm0, %v891_v40 }
 0xac4   :  { %v921_v42 = vpop.f32.mrf.mxu3 }
 0xac5   :  { %v922_v44 = vadd.f32 %v1837_v41, %v921_v42 }
 0xac7   :  { %v926_v45 = vpack.c.bf16 %v922_v44, %v922_v44 }
 0xac9   :  { %983 = vrot.lane.b32.xlu2 %v926_v45, %s2233_s9  ;;  %985 = vrot.lane.b32.xlu1 %v926_v45, %s2235_s14 }
 0xacc   :  { %v923_v46 = vpop.f32.mrf.mxu3 }
 0xacd   :  { %v924_v47 = vadd.f32 %v1837_v41, %v923_v46 }
 0xacf   :  { %v2553_v48 = vpack.c.bf16 %v924_v47, %v924_v47 }
 0xad1   :  { %928 = vrot.lane.b32.xlu2 %v926_v45, %s2234_s29  ;;  %1018 = vrot.lane.b32.xlu1 %v926_v45, %s2237_s12 }
 0xad9   :  { %1141 = vrot.lane.b32.xlu2 %v2553_v48, %s2233_s9  ;;  %1143 = vrot.lane.b32.xlu1 %v2553_v48, %s2235_s14  ;;  %s1597_s9 = sshll.u32 %s2690_s19, 4  ;;  %s2243_s19 = smov [#allocation20]   ;;  %s1598_s9 = int_to_ptr.hbm [resolvable:$true] %s1597_s9 }
 0xada   :  { %s1609_s14 = sshll.u32 %s2243_s19, 4  ;;  %s1610_s14 = int_to_ptr.vmem [resolvable:$true] %s1609_s14 }
 0xb23   :  { %v984_v51 = vpop.permute.xlu2 %983 }
 0xb2b   :  { %v929_v53 = vpop.permute.xlu2 %928 }
 0xb2c   :  { %v934_v54 = vsel %vm342_vm8, %v929_v53, 0 }
 0xb2d   :  { %943 = vmatpush.bf16.xpose.msra.mxu2 %v934_v54 }
 0xb33   :  { %v1142_v17 = vpop.permute.xlu2 %1141 }
 0xb34   :  { %1705 = vmatmul.msk.bf16.vlgmr.msra.gmra.mxu2 %vm342_vm8, %v926_v45 }
 0xb35   :  { %1056 = vmatpush.bf16.msrb.mxu2 %v1787_v52 }
 0xb3b   :  { %v986_v55 = vpop.permute.xlu1 %985 }
 0xb3c   :  { %v991_v56 = vsel %vm342_vm8, %v986_v55, 0 }
 0xb3d   :  { %1000 = vmatpush.bf16.xpose.msra.mxu1 %v991_v56 }
 0xb43   :  { %v1019_v57 = vpop.permute.xlu1 %1018 }
 0xb44   :  { %v1024_v58 = vsel %vm380_vm10, %v1019_v57, 0  ;;  %1707 = vmatmul.msk.bf16.vlgmr.msra.gmra.mxu1 %vm342_vm8, %v984_v51 }
 0xb45   :  { %1033 = vmatpush.bf16.msra.mxu3 %v1024_v58 }
 0xb4b   :  { %v1144_v59 = vpop.permute.xlu1 %1143 }
 0xb4c   :  { %v1149_v50 = vsel %vm342_vm8, %v1144_v59, 0 }
 0xb4d   :  { %1158 = vmatpush.bf16.xpose.msra.mxu2 %v1149_v50 }
 0xbb7   :  { %v945_v60 = vpop.f32.mrf.mxu2 }
 0xbb8   :  { %v946_v61 = vadd.f32 %v945_v60, %v2445_v0 }
 0xbba   :  { %v949_v62 = vsel %vm362_vm9, %v946_v61, -inf }
 0xbbb   :  { %950 = vmax.xlane.f32.xlu1 %v949_v62  ;;  %v1838_v62 = vld [vmem:[#allocation8 + $0x1] ss:$0 sm:$0xff] }
 0xbbf   :  { %v947_v63 = vpop.f32.mrf.mxu2 }
 0xbc1   :  { %v1002_v1 = vpop.f32.mrf.mxu1 }
 0xbc2   :  { %v1003_v2 = vadd.f32 %v1002_v1, %v2445_v0 }
 0xbc4   :  { %v1006_v3 = vsel %vm362_vm9, %v1003_v2, -inf }
 0xbc5   :  { %1007 = vmax.xlane.f32.xlu0 %v1006_v3 }
 0xbc9   :  { %v1004_v4 = vpop.f32.mrf.mxu1 }
 0xc2e   :  { %v951_v5 = vpop.xlane.xlu1 %950 }
 0xc2f   :  { %v952_v6 = vsub.f32 %v946_v61, %v951_v5 }
 0xc31   :  { %v953_v7 = vmul.f32 1.442695, %v952_v6 }
 0xc33   :  { %1880 = vpow2.f32 %v953_v7 }
 0xc38   :  { %v1008_v8 = vpop.xlane.xlu0 %1007 }
 0xc39   :  { %v1881_v9 = vpop.eup %1880  ;;  %v1009_v11 = vsub.f32 %v1003_v2, %v1008_v8 }
 0xc3a   :  { %v955_v13 = vsel %vm362_vm9, %v1881_v9, 0.0 }
 0xc3b   :  { %v1010_v14 = vmul.f32 1.442695, %v1009_v11  ;;  %956 = vadd.xlane.f32.xlu2 %v955_v13 }
 0xc3d   :  { %1882 = vpow2.f32 %v1010_v14 }
 0xc43   :  { %v1883_v15 = vpop.eup %1882 }
 0xc44   :  { %v1012_v16 = vsel %vm362_vm9, %v1883_v15, 0.0 }
 0xc45   :  { %1013 = vadd.xlane.f32.xlu0 %v1012_v16 }
 0xc59   :  { %1086 = vrot.lane.b32.xlu0 %v2553_v48, %s2234_s29  ;;  %s2241_s29 = smov 128  }
 0xc61   :  { %961 = vrot.lane.b32.xlu0 %v926_v45, %s2236_s27 }
 0xcae   :  { %v957_v21 = vpop.xlane.xlu2 %956 }
 0xcb8   :  { %v1014_v0 = vpop.xlane.xlu0 %1013 }
 0xcb9   :  { %1884 = vrcp.f32 %v1014_v0 }
 0xcba   :  { %1886 = vrcp.f32 %v957_v21 }
 0xcbf   :  { %v1885_v18 = vpop.eup %1884 }
 0xcc0   :  { %v1016_v19 = vmul.f32 %v1885_v18, %v1883_v15  ;;  %v1887_v24 = vpop.eup %1886 }
 0xcc1   :  { %v959_v25 = vmul.f32 %v1887_v24, %v1881_v9 }
 0xcc2   :  { %v1017_v20 = vpack.c.bf16 %v1016_v19, %v1016_v19 }
 0xcc3   :  { %v960_v28 = vpack.c.bf16 %v959_v25, %v959_v25 }
 0xcc4   :  { %1708 = vmatmul.msk.bf16.vlgmr.msra.gmra.mxu3 %vm362_vm9, %v1017_v20 }
 0xccb   :  { %v1087_v22 = vpop.permute.xlu0 %1086 }
 0xccc   :  { %v1092_v23 = vsel %vm342_vm8, %v1087_v22, 0 }
 0xccd   :  { %1101 = vmatpush.bf16.xpose.msrb.mxu1 %v1092_v23 }
 0xcd3   :  { %v962_v26 = vpop.permute.xlu0 %961 }
 0xcd4   :  { %v967_v27 = vsel %vm380_vm10, %v962_v26, 0  ;;  %1719 = vmatmul.msk.bf16.vlgmr.msrb.gmra.mxu1 %vm342_vm8, %v2553_v48 }
 0xcd5   :  { %1208 = vmatpush.bf16.msra.mxu1 %v1787_v52  ;;  %976 = vmatpush.bf16.msra.mxu0 %v967_v27 }
 0xcd8   :  { %1706 = vmatmul.msk.bf16.vlgmr.msra.gmra.mxu0 %vm362_vm9, %v960_v28 }
 0xcd9   :  { %1078 = vmatpush.bf16.msrb.mxu0 %v1786_v29 }
 0xd47   :  { %v1035_v30 = vpop.f32.mrf.mxu3 }
 0xd48   :  { %v1039_v31 = vpack.c.bf16 %v1035_v30, %v1035_v30 }
 0xd4a   :  { %1713 = vmatmul.msk.bf16.vlgmr.msrb.gmra.mxu2 %vm342_vm8, %v1039_v31 }
 0xd4f   :  { %v1037_v32 = vpop.f32.mrf.mxu3 }
 0xd51   :  { %v1103_v33 = vpop.f32.mrf.mxu1 }
 0xd52   :  { %v1104_v34 = vadd.f32 %v1103_v33, %v2474_v43 }
 0xd54   :  { %v1107_v35 = vsel %vm362_vm9, %v1104_v34, -inf }
 0xd55   :  { %1108 = vmax.xlane.f32.xlu0 %v1107_v35  ;;  %v978_v36 = vpop.f32.mrf.mxu0 }
 0xd56   :  { %v982_v12 = vpack.c.bf16 %v978_v36, %v978_v36 }
 0xd58   :  { %1718 = vmatmul.msk.bf16.vlgmr.msrb.gmra.mxu0 %vm342_vm8, %v982_v12 }
 0xd59   :  { %v1105_v37 = vpop.f32.mrf.mxu1 }
 0xd5a   :  { %1721 = vmatmul.msk.bf16.vlgmr.msra.gmra.mxu2 %vm342_vm8, %v1142_v17 }
 0xd5d   :  { %v980_v49 = vpop.f32.mrf.mxu0 }
 0xd69   :  { %1176 = vrot.lane.b32.xlu0 %v2553_v48, %s2237_s12 }
 0xdc8   :  { %v1109_v40 = vpop.xlane.xlu0 %1108 }
 0xdc9   :  { %v1110_v41 = vsub.f32 %v1104_v34, %v1109_v40 }
 0xdcb   :  { %v1111_v42 = vmul.f32 1.442695, %v1110_v41  ;;  %v1788_v41 = vld [vmem:[%s2682_s11 + $0x10] sm:$0xff] }
 0xdcd   :  { %1888 = vpow2.f32 %v1111_v42  ;;  %v1058_v44 = vpop.f32.mrf.mxu2 }
 0xdd3   :  { %v1889_v45 = vpop.eup %1888 }
 0xdd4   :  { %v1113_v46 = vsel %vm362_vm9, %v1889_v45, 0.0 }
 0xdd5   :  { %v1060_v47 = vpop.f32.mrf.mxu2  ;;  %1114 = vadd.xlane.f32.xlu2 %v1113_v46  ;;  %v1080_v51 = vpop.f32.mrf.mxu0 }
 0xdd6   :  { %v1081_v52 = vadd.f32 %v1080_v51, %v1058_v44 }
 0xdd8   :  { %v1235_v2 = vadd.f32 %v1838_v62, %v1081_v52 }
 0xddb   :  { %v1177_v53 = vpop.permute.xlu0 %1176 }
 0xddc   :  { %v1182_v54 = vsel %vm380_vm10, %v1177_v53, 0 }
 0xddd   :  { %v1082_v55 = vpop.f32.mrf.mxu0  ;;  %v1160_v56 = vpop.f32.mrf.mxu2  ;;  %1191 = vmatpush.bf16.msra.mxu0 %v1182_v54 }
 0xdde   :  { %v1161_v57 = vadd.f32 %v1160_v56, %v2474_v43  ;;  %v1237_v43 = vadd.f32 %v1235_v2, %v2542_v38 }
 0xde0   :  { %v1164_v58 = vsel %vm362_vm9, %v1161_v57, -inf  ;;  %v1243_v5 = vsel %vm225_vm0, %v1237_v43, 0.0 }
 0xde1   :  { %1165 = vmax.xlane.f32.xlu1 %v1164_v58 }
 0xde5   :  { %v1162_v59 = vpop.f32.mrf.mxu2 }
 0xdfa   :  { %1119 = vrot.lane.b32.xlu1 %v2553_v48, %s2236_s27 }
 0xe48   :  { %v1115_v1 = vpop.xlane.xlu2 %1114 }
 0xe54   :  { %v1166_v50 = vpop.xlane.xlu1 %1165 }
 0xe55   :  { %v1167_v60 = vsub.f32 %v1161_v57, %v1166_v50  ;;  %v1839_v50 = vld [vmem:[#allocation10 + $0x1] ss:$0 sm:$0xff] }
 0xe57   :  { %v1168_v61 = vmul.f32 1.442695, %v1167_v60 }
 0xe59   :  { %1890 = vpow2.f32 %v1168_v61 }
 0xe5a   :  { %1892 = vrcp.f32 %v1115_v1 }
 0xe5f   :  { %v1891_v63 = vpop.eup %1890 }
 0xe60   :  { %v1170_v3 = vsel %vm362_vm9, %v1891_v63, 0.0  ;;  %v1893_v4 = vpop.eup %1892 }
 0xe61   :  { %1171 = vadd.xlane.f32.xlu2 %v1170_v3  ;;  %v1117_v6 = vmul.f32 %v1893_v4, %v1889_v45 }
 0xe63   :  { %v1118_v8 = vpack.c.bf16 %v1117_v6, %v1117_v6  ;;  %v1793_v6 = vld [vmem:[%s2684_s13 + $0x38] sm:$0xff] }
 0xe64   :  { %1401 = vmatpush.bf16.msrb.mxu0 %v1793_v6 }
 0xe69   :  { %1244 = vadd.xlane.f32.xlu2 %v1243_v5 }
 0xe6c   :  { %v1120_v48 = vpop.permute.xlu1 %1119 }
 0xe6d   :  { %v1125_v7 = vsel %vm380_vm10, %v1120_v48, 0  ;;  %v1792_v48 = vld [vmem:[%s2684_s13 + $0x30] sm:$0xff] }
 0xe6e   :  { %1134 = vmatpush.bf16.msrb.mxu3 %v1125_v7  ;;  %1402 = vmatpush.bf16.msrb.mxu0 %v1792_v48  ;;  %v1791_v7 = vld [vmem:[%s2684_s13 + $0x28] sm:$0xff] }
 0xe71   :  { %1720 = vmatmul.msk.bf16.vlgmr.msrb.gmra.mxu3 %vm362_vm9, %v1118_v8  ;;  %v1790_v8 = vld [vmem:[%s2684_s13 + $0x20] sm:$0xff] }
 0xe72   :  { %1224 = vmatpush.bf16.msra.mxu3 %v1786_v29  ;;  %1403 = vmatpush.bf16.msrb.mxu0 %v1791_v7 }
 0xe76   :  { %1404 = vmatpush.bf16.msrb.mxu0 %v1790_v8 }
 0xed4   :  { %v1172_v9 = vpop.xlane.xlu2 %1171 }
 0xed5   :  { %1894 = vrcp.f32 %v1172_v9  ;;  %v1841_v9 = vld [vmem:[#allocation13 + $0x1] ss:$0 sm:$0xff] }
 0xedb   :  { %v1895_v11 = vpop.eup %1894 }
 0xedc   :  { %v1174_v13 = vmul.f32 %v1895_v11, %v1891_v63  ;;  %v1245_v14 = vpop.xlane.xlu2 %1244  ;;  %v1840_v63 = vld [vmem:[#allocation11 + $0x1] ss:$0 sm:$0xff] }
 0xedd   :  { %v1249_v38 = vmul.f32 %v1245_v14, %v2414_v10 }
 0xede   :  { %v1175_v15 = vpack.c.bf16 %v1174_v13, %v1174_v13 }
 0xedf   :  { %v1251_v16 = vsub.f32 %v1237_v43, %v1249_v38 }
 0xee0   :  { %1722 = vmatmul.msk.bf16.vlgmr.msra.gmra.mxu0 %vm362_vm9, %v1175_v15 }
 0xee1   :  { %v1253_v0 = vmul.f32 %v1251_v16, %v1251_v16 }
 0xee3   :  { %v1255_v17 = vsel %vm225_vm0, %v1253_v0, 0.0 }
 0xee4   :  { %1256 = vadd.xlane.f32.xlu1 %v1255_v17 }
 0xef4   :  { %v1136_v18 = vpop.f32.mrf.mxu3 }
 0xef5   :  { %v1140_v19 = vpack.c.bf16 %v1136_v18, %v1136_v18 }
 0xef7   :  { %1724 = vmatmul.msk.bf16.vlgmr.msra.gmra.mxu3 %vm342_vm8, %v1140_v19 }
 0xefc   :  { %v1138_v20 = vpop.f32.mrf.mxu3 }
 0xf57   :  { %v1257_v12 = vpop.xlane.xlu1 %1256 }
 0xf58   :  { %v1261_v37 = vmul.f32 %v1257_v12, %v2414_v10 }
 0xf5a   :  { %v1263_v49 = vadd.f32 1e-12, %v1261_v37 }
 0xf5c   :  { %1896 = vrsqrt.f32 %v1263_v49  ;;  %vm1271_vm9 = vweird.f32 %v1263_v49 }
 0xf5d   :  { %v1193_v21 = vpop.f32.mrf.mxu0 }
 0xf5e   :  { %v1197_v22 = vpack.c.bf16 %v1193_v21, %v1193_v21 }
 0xf60   :  { %1723 = vmatmul.msk.bf16.vlgmr.msra.gmra.mxu1 %vm342_vm8, %v1197_v22 }
 0xf62   :  { %v1897_v40 = vpop.eup %1896 }
 0xf63   :  { %v1266_v42 = vmul.f32 %v1897_v40, %v1263_v49  ;;  %vm1272_vm8 = vweird.f32 %v1897_v40 }
 0xf64   :  { %vm1273_vm10 = vmor %vm1271_vm9, %vm1272_vm8  ;;  %vm1555_vm8 = vcmask 7168  }
 0xf65   :  { %v1195_v23 = vpop.f32.mrf.mxu0  ;;  %v1267_v44 = vmul.f32 %v1897_v40, %v1266_v42 }
 0xf67   :  { %v1268_v51 = vmul.f32 0.5, %v1267_v44 }
 0xf69   :  { %v1269_v52 = vsub.f32 1.5, %v1268_v51 }
 0xf6b   :  { %v1270_v54 = vmul.f32 %v1897_v40, %v1269_v52 }
 0xf6d   :  { %v1274_v57 = vsel %vm1273_vm10, %v1897_v40, %v1270_v54 }
 0xf6e   :  { %v1285_v60 = vmul.f32 %v1274_v57, %v1251_v16 }
 0xf70   :  { %v1290_v1 = vmul.f32 %v1839_v50, %v1285_v60 }
 0xf72   :  { %v1295_v43 = vadd.f32 %v1840_v63, %v1290_v1 }
 0xf7a   :  { %v1226_v24 = vpop.f32.mrf.mxu3 }
 0xf82   :  { %v1228_v25 = vpop.f32.mrf.mxu3 }
 0xfdd   :  { %v1210_v26 = vpop.f32.mrf.mxu1 }
 0xfde   :  { %v1227_v27 = vadd.f32 %v1226_v24, %v1210_v26 }
 0xfe0   :  { %v1236_v28 = vadd.f32 %v1838_v62, %v1227_v27 }
 0xfe2   :  { %v1238_v29 = vadd.f32 %v1236_v28, %v2544_v39  ;;  %v1789_v39 = vld [vmem:[%s2682_s11 + $0x18] sm:$0xff] }
 0xfe3   :  { %1329 = vmatpush.bf16.msrb.mxu2 %v1789_v39 }
 0xfe4   :  { %v1246_v30 = vsel %vm225_vm0, %v1238_v29, 0.0 }
 0xfe5   :  { %v1212_v31 = vpop.f32.mrf.mxu1  ;;  %1247 = vadd.xlane.f32.xlu2 %v1246_v30 }
 0xfe7   :  { %1330 = vmatpush.bf16.msrb.mxu2 %v1788_v41 }
0x1058   :  { %v1248_v32 = vpop.xlane.xlu2 %1247 }
0x1059   :  { %v1250_v33 = vmul.f32 %v1248_v32, %v2414_v10 }
0x105b   :  { %v1252_v34 = vsub.f32 %v1238_v29, %v1250_v33  ;;  %v1842_v33 = vld [vmem:[#allocation14 + $0x1] ss:$0 sm:$0xff] }
0x105d   :  { %v1254_v35 = vmul.f32 %v1252_v34, %v1252_v34 }
0x105f   :  { %v1258_v36 = vsel %vm225_vm0, %v1254_v35, 0.0 }
0x1060   :  { %1259 = vadd.xlane.f32.xlu2 %v1258_v36 }
0x10d3   :  { %v1260_v45 = vpop.xlane.xlu2 %1259 }
0x10d4   :  { %v1262_v46 = vmul.f32 %v1260_v45, %v2414_v10 }
0x10d6   :  { %v1264_v47 = vadd.f32 1e-12, %v1262_v46 }
0x10d8   :  { %1898 = vrsqrt.f32 %v1264_v47  ;;  %vm1281_vm13 = vweird.f32 %v1264_v47 }
0x10de   :  { %v1899_v53 = vpop.eup %1898 }
0x10df   :  { %v1276_v55 = vmul.f32 %v1899_v53, %v1264_v47  ;;  %vm1282_vm12 = vweird.f32 %v1899_v53 }
0x10e0   :  { %vm1283_vm14 = vmor %vm1281_vm13, %vm1282_vm12 }
0x10e1   :  { %v1277_v56 = vmul.f32 %v1899_v53, %v1276_v55  ;;  %v1795_v55 = vld [vmem:[%s2688_s17 + $0x8] sm:$0xff] }
0x10e2   :  { %1501 = vmatpush.bf16.msrb.mxu1 %v1795_v55 }
0x10e3   :  { %v1278_v58 = vmul.f32 0.5, %v1277_v56 }
0x10e5   :  { %v1279_v59 = vsub.f32 1.5, %v1278_v58  ;;  %v1794_v58 = vld [vmem:[%s2688_s17] sm:$0xff] }
0x10e6   :  { %1502 = vmatpush.bf16.msrb.mxu1 %v1794_v58 }
0x10e7   :  { %v1280_v61 = vmul.f32 %v1899_v53, %v1279_v59 }
0x10e9   :  { %v1284_v62 = vsel %vm1283_vm14, %v1899_v53, %v1280_v61 }
0x10ea   :  { %v1286_v2 = vmul.f32 %v1284_v62, %v1252_v34 }
0x10ec   :  { %v1291_v3 = vmul.f32 %v1839_v50, %v1286_v2 }
0x10ee   :  { %v1296_v4 = vadd.f32 %v1840_v63, %v1291_v3 }
0x10f0   :  { %v1297_v5 = vpack.c.bf16 %v1296_v4, %v1295_v43 }
0x10f2   :  { %1737 = vmatmul.msk.bf16.vlgmr.msrb.gmra.mxu2 %vm225_vm0, %v1297_v5 }
0x1175   :  { %v1332_v11 = vpop.f32.mrf.mxu2 }
0x1176   :  { %v1333_v13 = vadd.f32 %v1841_v9, %v1332_v11 }
0x1178   :  { %v1339_v14 = vmul.f32 0.044715, %v1333_v13  ;;  %v1337_v27 = vmul.f32 0.5, %v1333_v13 }
0x117a   :  { %v1341_v38 = vmul.f32 %v1339_v14, %v1333_v13  ;;  %v1844_v14 = vld [vmem:[#allocation17 + $0x1] ss:$0 sm:$0xff] }
0x117c   :  { %v1343_v15 = vmul.f32 %v1341_v38, %v1333_v13 }
0x117d   :  { %v1334_v16 = vpop.f32.mrf.mxu2 }
0x117e   :  { %v1345_v0 = vadd.f32 %v1343_v15, %v1333_v13  ;;  %v1335_v17 = vadd.f32 %v1841_v9, %v1334_v16  ;;  %v1843_v9 = vld [vmem:[#allocation16 + $0x1] ss:$0 sm:$0xff] }
0x1180   :  { %v1340_v18 = vmul.f32 0.044715, %v1335_v17  ;;  %v1347_v19 = vmul.f32 0.7978846, %v1345_v0  ;;  %v1338_v28 = vmul.f32 0.5, %v1335_v17 }
0x1182   :  { %v1342_v20 = vmul.f32 %v1340_v18, %v1335_v17  ;;  %1900 = vtanh.f32 %v1347_v19  ;;  %v1845_v19 = vld [vmem:[%s2689_s18] ss:$0 sm:$0xff] }
0x1184   :  { %v1344_v21 = vmul.f32 %v1342_v20, %v1335_v17 }
0x1186   :  { %v1346_v22 = vadd.f32 %v1344_v21, %v1335_v17 }
0x1188   :  { %v1348_v23 = vmul.f32 0.7978846, %v1346_v22  ;;  %v1901_v24 = vpop.eup %1900 }
0x1189   :  { %v1351_v25 = vadd.f32 1.0, %v1901_v24  ;;  %v1511_v24 = vld [vmem:[%s2703_s26] sm:$0xff] }
0x118a   :  { %1902 = vtanh.f32 %v1348_v23  ;;  %vm1551_vm11 = vcmp.ne.s32.totalorder %v1511_v24, 4294967196 }
0x118b   :  { %v1353_v30 = vmul.f32 %v1351_v25, %v1337_v27  ;;  %v2238_v25 = vmov 0  }
0x118c   :  { %1824 = vset.pattern.permute.xlu1 %v2238_v25  ;;  %1825 = vset.pattern.permute.xlu2 %v2238_v25 }
0x118d   :  { %1826 = vset.pattern.permute.xlu0 %v2238_v25 }
0x1190   :  { %v1903_v26 = vpop.eup %1902 }
0x1191   :  { %v1352_v29 = vadd.f32 1.0, %v1903_v26 }
0x1193   :  { %v1354_v31 = vmul.f32 %v1352_v29, %v1338_v28 }
0x1195   :  { %v1355_v32 = vpack.c.bf16 %v1354_v31, %v1353_v30 }
0x1197   :  { %1762 = vmatmul.msk.bf16.vlgmr.msrb.gmra.mxu0 %vm805_vm2, %v1355_v32 }
0x1214   :  { %v1406_v34 = vpop.f32.mrf.mxu0 }
0x1215   :  { %v1407_v35 = vadd.f32 %v1842_v33, %v1406_v34  ;;  %v1512_v34 = vld [vmem:[%s2703_s26 + $0x8] sm:$0xff] }
0x1216   :  { %vm1552_vm7 = vcmp.ne.s32.totalorder %v1512_v34, 4294967196 }
0x1217   :  { %v1411_v36 = vadd.f32 %v1407_v35, %v1295_v43 }
0x1219   :  { %v1417_v12 = vsel %vm225_vm0, %v1411_v36, 0.0 }
0x121a   :  { %1418 = vadd.xlane.f32.xlu0 %v1417_v12 }
0x121c   :  { %v1408_v37 = vpop.f32.mrf.mxu0 }
0x121d   :  { %v1409_v49 = vadd.f32 %v1842_v33, %v1408_v37 }
0x121f   :  { %v1412_v39 = vadd.f32 %v1409_v49, %v1296_v4 }
0x1221   :  { %v1420_v40 = vsel %vm225_vm0, %v1412_v39, 0.0 }
0x1222   :  { %1421 = vadd.xlane.f32.xlu2 %v1420_v40 }
0x128d   :  { %v1419_v41 = vpop.xlane.xlu0 %1418 }
0x128e   :  { %v1423_v42 = vmul.f32 %v1419_v41, %v2414_v10 }
0x1290   :  { %v1425_v44 = vsub.f32 %v1411_v36, %v1423_v42  ;;  %v1533_v36 = vlaneseq }
0x1292   :  { %v1427_v45 = vmul.f32 %v1425_v44, %v1425_v44  ;;  %v2659_v12 = vand.u32 127, %v1533_v36 }
0x1294   :  { %v1429_v46 = vsel %vm225_vm0, %v1427_v45, 0.0  ;;  %vm1585_vm9 = vcmp.eq.s32.totalorder %v2659_v12, 1  ;;  %vm1584_vm10 = vcmp.eq.s32.totalorder %v2659_v12, 0 }
0x1295   :  { %v1422_v47 = vpop.xlane.xlu2 %1421  ;;  %1430 = vadd.xlane.f32.xlu2 %v1429_v46 }
0x1296   :  { %v1424_v51 = vmul.f32 %v1422_v47, %v2414_v10 }
0x1298   :  { %v1426_v52 = vsub.f32 %v1412_v39, %v1424_v51 }
0x129a   :  { %v1428_v53 = vmul.f32 %v1426_v52, %v1426_v52 }
0x129c   :  { %v1432_v54 = vsel %vm225_vm0, %v1428_v53, 0.0 }
0x129d   :  { %1433 = vadd.xlane.f32.xlu2 %v1432_v54 }
0x1308   :  { %v1431_v56 = vpop.xlane.xlu2 %1430 }
0x1309   :  { %v1435_v57 = vmul.f32 %v1431_v56, %v2414_v10 }
0x130b   :  { %v1437_v59 = vadd.f32 1e-12, %v1435_v57 }
0x130d   :  { %1904 = vrsqrt.f32 %v1437_v59  ;;  %vm1445_vm1 = vweird.f32 %v1437_v59 }
0x1310   :  { %v1434_v50 = vpop.xlane.xlu2 %1433 }
0x1311   :  { %v1436_v60 = vmul.f32 %v1434_v50, %v2414_v10 }
0x1313   :  { %v1905_v61 = vpop.eup %1904  ;;  %v1438_v62 = vadd.f32 1e-12, %v1436_v60 }
0x1314   :  { %v1440_v63 = vmul.f32 %v1905_v61, %v1437_v59  ;;  %vm1446_vm15 = vweird.f32 %v1905_v61 }
0x1315   :  { %1906 = vrsqrt.f32 %v1438_v62  ;;  %vm1447_vm2 = vmor %vm1445_vm1, %vm1446_vm15  ;;  %vm1455_vm4 = vweird.f32 %v1438_v62 }
0x1316   :  { %v1441_v1 = vmul.f32 %v1905_v61, %v1440_v63 }
0x1318   :  { %v1442_v2 = vmul.f32 0.5, %v1441_v1 }
0x131a   :  { %v1443_v3 = vsub.f32 1.5, %v1442_v2 }
0x131b   :  { %v1907_v43 = vpop.eup %1906 }
0x131c   :  { %v1444_v4 = vmul.f32 %v1905_v61, %v1443_v3  ;;  %v1450_v5 = vmul.f32 %v1907_v43, %v1438_v62  ;;  %vm1456_vm3 = vweird.f32 %v1907_v43 }
0x131d   :  { %vm1457_vm5 = vmor %vm1455_vm4, %vm1456_vm3 }
0x131e   :  { %v1451_v6 = vmul.f32 %v1907_v43, %v1450_v5  ;;  %v1448_v48 = vsel %vm1447_vm2, %v1905_v61, %v1444_v4 }
0x131f   :  { %v1459_v10 = vmul.f32 %v1448_v48, %v1425_v44 }
0x1320   :  { %v1452_v7 = vmul.f32 0.5, %v1451_v6 }
0x1321   :  { %v1464_v38 = vmul.f32 %v1843_v9, %v1459_v10 }
0x1322   :  { %v1453_v8 = vsub.f32 1.5, %v1452_v7 }
0x1323   :  { %v1469_v0 = vadd.f32 %v1844_v14, %v1464_v38 }
0x1324   :  { %v1454_v11 = vmul.f32 %v1907_v43, %v1453_v8 }
0x1326   :  { %v1458_v13 = vsel %vm1457_vm5, %v1907_v43, %v1454_v11 }
0x1327   :  { %v1460_v15 = vmul.f32 %v1458_v13, %v1426_v52  ;;  %v2239_v52 = vmov 0.0  }
0x1328   :  { %v1772_v53 = vsel %vm1551_vm11, 1.0, %v2239_v52  ;;  %v1773_v54 = vsel %vm1552_vm7, 1.0, %v2239_v52 }
0x1329   :  { %v1465_v16 = vmul.f32 %v1843_v9, %v1460_v15  ;;  %v1572_v55 = vsel %vm1555_vm8, %v1772_v53, 0.0  ;;  %v1573_v56 = vsel %vm1555_vm8, %v1773_v54, 0.0 }
0x132a   :  { %v1574_v57 = vadd.f32 %v1573_v56, %v1572_v55 }
0x132b   :  { %v1470_v17 = vadd.f32 %v1844_v14, %v1465_v16 }
0x132d   :  { %v1471_v18 = vpack.c.bf16 %v1470_v17, %v1469_v0 }
0x132f   :  { %1771 = vmatmul.msk.bf16.vlgmr.msrb.gmra.mxu1 %vm225_vm0, %v1471_v18 }
0x13ac   :  { %v1504_v20 = vpop.f32.mrf.mxu1 }
0x13ad   :  { %v1505_v21 = vadd.f32 %v1845_v19, %v1504_v20 }
0x13af   :  { %1509 = vst [vmem:[#allocation19] sm:$0xff] %v1505_v21  ;;  %1513 = vmax.xlane.f32.xlu2 %v1505_v21 }
0x13b4   :  { %v1506_v22 = vpop.f32.mrf.mxu1 }
0x13b5   :  { %v1507_v23 = vadd.f32 %v1845_v19, %v1506_v22 }
0x13b7   :  { %1510 = vst [vmem:[#allocation19 + $0x8] sm:$0xff] %v1507_v23  ;;  %1515 = vmax.xlane.f32.xlu1 %v1507_v23 }
0x13b8   :  { %1603 = dma.vmem_to_hbm [thread:$0]  %s1596_s30, 256, %s1598_s9, [#allocation4], %s2241_s29, %s2241_s29, %s2242_s7  }
0x13d0   :  { %1536 = vperm.xlu1 %1824, %v1511_v24  }
0x13fa   :  { %1575 = vadd.xlane.f32.xlu1 %v1574_v57 }
0x1422   :  { %v1514_v26 = vpop.xlane.xlu2 %1513 }
0x1423   :  { %v1517_v27 = vsub.f32 %v1505_v21, %v1514_v26 }
0x1425   :  { %v1519_v28 = vmul.f32 1.442695, %v1517_v27 }
0x1427   :  { %1908 = vpow2.f32 %v1519_v28 }
0x142a   :  { %v1516_v29 = vpop.xlane.xlu1 %1515 }
0x142b   :  { %v1518_v30 = vsub.f32 %v1507_v23, %v1516_v29 }
0x142d   :  { %v1909_v31 = vpop.eup %1908  ;;  %v1521_v32 = vmul.f32 1.442695, %v1518_v30 }
0x142e   :  { %1523 = vadd.xlane.f32.xlu2 %v1909_v31 }
0x142f   :  { %1910 = vpow2.f32 %v1521_v32 }
0x1435   :  { %v1911_v33 = vpop.eup %1910 }
0x1436   :  { %1525 = vadd.xlane.f32.xlu0 %v1911_v33 }
0x1442   :  { %v1537_v37 = vpop.permute.xlu1 %1536 }
0x1443   :  { %vm1541_vm0 = vcmp.eq.s32.totalorder %v2659_v12, %v1537_v37 }
0x1446   :  { %1539 = vperm.xlu2 %1825, %v1512_v34  }
0x146d   :  { %v1576_v3 = vpop.xlane.xlu1 %1575 }
0x146e   :  { %v1577_v43 = vrot.slane %v1576_v3, 4 }
0x1470   :  { %v1578_v4 = vadd.f32 %v1577_v43, %v1576_v3 }
0x1472   :  { %v1579_v5 = vrot.slane %v1578_v4, 2 }
0x1474   :  { %v1580_v8 = vadd.f32 %v1579_v5, %v1578_v4 }
0x1476   :  { %v1581_v11 = vrot.slane %v1580_v8, 1 }
0x1478   :  { %v1582_v38 = vadd.f32 %v1581_v11, %v1580_v8 }
0x14a1   :  { %v1524_v35 = vpop.xlane.xlu2 %1523 }
0x14a2   :  { %1912 = vlog2.f32 %v1524_v35 }
0x14a8   :  { %v1913_v49 = vpop.eup %1912 }
0x14a9   :  { %v1528_v39 = vmul.f32 0.6931472, %v1913_v49  ;;  %v1526_v40 = vpop.xlane.xlu0 %1525  ;;  %v1540_v44 = vpop.permute.xlu2 %1539 }
0x14aa   :  { %1914 = vlog2.f32 %v1526_v40  ;;  %vm1542_vm6 = vcmp.eq.s32.totalorder %v2659_v12, %v1540_v44 }
0x14ab   :  { %v1531_v41 = vsub.f32 %v1517_v27, %v1528_v39 }
0x14ad   :  { %v1543_v42 = vsel %vm1541_vm0, %v1531_v41, 0.0 }
0x14ae   :  { %1545 = vadd.xlane.f32.xlu0 %v1543_v42 }
0x14b0   :  { %v1915_v45 = vpop.eup %1914 }
0x14b1   :  { %v1530_v46 = vmul.f32 0.6931472, %v1915_v45 }
0x14b3   :  { %v1532_v47 = vsub.f32 %v1518_v30, %v1530_v46 }
0x14b5   :  { %v1544_v51 = vsel %vm1542_vm6, %v1532_v47, 0.0 }
0x14b6   :  { %1547 = vadd.xlane.f32.xlu0 %v1544_v51 }
0x1521   :  { %v1546_v58 = vpop.xlane.xlu0 %1545 }
0x1522   :  { %v1549_v59 = vsub.f32 0.0, %v1546_v58 }
0x1524   :  { %v1553_v60 = vsel %vm1551_vm11, %v1549_v59, 0.0 }
0x1525   :  { %v1556_v63 = vsel %vm1555_vm8, %v1553_v60, 0.0 }
0x1529   :  { %v1548_v50 = vpop.xlane.xlu0 %1547 }
0x152a   :  { %v1550_v61 = vsub.f32 0.0, %v1548_v50 }
0x152c   :  { %v1554_v62 = vsel %vm1552_vm7, %v1550_v61, 0.0 }
0x152d   :  { %v1557_v1 = vsel %vm1555_vm8, %v1554_v62, 0.0 }
0x152e   :  { %v1558_v2 = vadd.f32 %v1557_v1, %v1556_v63 }
0x1530   :  { %1559 = vadd.xlane.f32.xlu0 %v1558_v2 }
0x15a3   :  { %v1560_v6 = vpop.xlane.xlu0 %1559 }
0x15a4   :  { %v1561_v48 = vrot.slane %v1560_v6, 4 }
0x15a6   :  { %v1562_v7 = vadd.f32 %v1561_v48, %v1560_v6 }
0x15a8   :  { %v1563_v9 = vrot.slane %v1562_v7, 2 }
0x15aa   :  { %v1564_v10 = vadd.f32 %v1563_v9, %v1562_v7 }
0x15ac   :  { %v1565_v13 = vrot.slane %v1564_v10, 1 }
0x15ae   :  { %v1566_v14 = vadd.f32 %v1565_v13, %v1564_v10 }
0x15b0   :  { %1796 = vpush %v1566_v14 }
0x15b1   :  { %1798 = vpush %v1582_v38 }
0x15e1   :  { %s1797_s27 = spop %1796 }
0x15e2   :  { %v1588_v15 = vstv %s1797_s27  ;;  %s1799_s23 = spop %1798 }
0x15e3   :  { %v1586_v16 = vstv %s1799_s23 }
0x15e4   :  { %v1587_v0 = vsel %vm1585_vm9, %v1586_v16, 0.0 }
0x15e5   :  { %v1589_v17 = vsel %vm1584_vm10, %v1588_v15, %v1587_v0 }
0x15e6   :  { %1590 = vst [vmem:[#allocation20] sm:$0x1] %v1589_v17 }
0x15e7   :  { %1614 = dma.vmem_to_hbm [thread:$0]  %s1610_s14, 16, %s1612_s0, [#allocation21]  }
0x15e8   :  { %2216 = dma.done.wait [#allocation4], 256  }
0x15e9   :  { %2217 = vsyncadd [#allocation4], 4294967040 }
0x15ea   :  { %2218 = dma.done.wait [#allocation21], 16  }
0x15eb   :  { %2219 = vsyncadd [#allocation21], 4294967280 }
0x15ec   :  { %1623 = vsyncpa [#allocation3], 1 }
0x15ed   :  { %1624 = vsyncpa [#allocation6], 1 }
0x15ee   :  { %1625 = vsyncpa [#allocation9], 1 }
0x15ef   :  { %1626 = vsyncpa [#allocation12], 1 }
0x15f0   :  { %1627 = vsyncpa [#allocation15], 1 }
0x15f1   :  { %1628 = vsyncpa [#allocation18], 1 }
0x15f2   :  { %1629 = vsyncpa [#allocation4], 1 }
0x15f3   :  { %1630 = vsyncpa [#allocation21], 1 }

</bundles_post_ra>
